<compile_context>
chip_gen: v5e
topology: v5e:2x2
jax: 0.10.0
libtpu: 0.0.40
codegen_flags: <defaults>
</compile_context>

<pallas_src>
import functools

import jax
import jax.numpy as jnp
from jax.experimental import pallas as pl
from jax.experimental.pallas import tpu as pltpu


def _ssim_kernel(dr_ref, brow_ref, bcol_ref, x_ref, y_ref, ssum_ref, *,
                 nb, h, w, win, k1, k2, n_valid, mask_tail):
    # dr_ref   : (N_pad,)   SMEM, per-batch data_range scalars
    # brow_ref : (oh, H)    VMEM, resident 0/1 row band
    # bcol_ref : (W, ow)    VMEM, resident column band scaled by 1/win^2
    # x_ref    : (NB, H, W) VMEM block of X (one batch-block)
    # y_ref    : (NB, H, W) VMEM block of Y
    # ssum_ref : (1, 1, 1)  VMEM block -> partial sum of the SSIM map
    g = pl.program_id(0)
    brow = brow_ref[...]
    bcol = bcol_ref[...]
    x = x_ref[...].astype(jnp.float32)
    y = y_ref[...].astype(jnp.float32)

    hi = jax.lax.Precision.HIGHEST  # keep f32 accuracy through the MXU

    def box_filter(z):
        # Column pass: one fused MXU matmul over all NB images of `z`.
        cs = jnp.dot(z.reshape(nb * h, w), bcol,
                     precision=hi, preferred_element_type=jnp.float32)
        # Row pass: one small MXU matmul per image (static sublane slices).
        return [
            jnp.dot(brow, cs[b * h:(b + 1) * h, :],
                    precision=hi, preferred_element_type=jnp.float32)
            for b in range(nb)
        ]

    ux_l = box_filter(x)
    uy_l = box_filter(y)
    uxx_l = box_filter(x * x)
    uyy_l = box_filter(y * y)
    uxy_l = box_filter(x * y)

    np_ = float(win * win)
    cov_norm = np_ / (np_ - 1.0)

    s_acc = None
    for b in range(nb):
        idx = g * nb + b
        dr = dr_ref[idx]
        c1 = (k1 * dr) * (k1 * dr)
        c2 = (k2 * dr) * (k2 * dr)

        ux, uy = ux_l[b], uy_l[b]
        uxx, uyy, uxy = uxx_l[b], uyy_l[b], uxy_l[b]

        # Explicit CSE of the squared / cross terms (used by both v* and A/B).
        uxux = ux * ux
        uyuy = uy * uy
        uxuy = ux * uy

        vx = cov_norm * (uxx - uxux)
        vy = cov_norm * (uyy - uyuy)
        vxy = cov_norm * (uxy - uxuy)

        a1 = 2.0 * uxuy + c1
        a2 = 2.0 * vxy + c2
        b1 = uxux + uyuy + c1
        b2 = vx + vy + c2
        # divide -> EUP reciprocal + VPU multiply (approx=False: full accuracy)
        s = (a1 * a2) * pl.reciprocal(b1 * b2, approx=False)

        if mask_tail:
            s = s * (idx < n_valid).astype(jnp.float32)
        s_acc = s if s_acc is None else s_acc + s

    # Single cross-lane reduction per grid step (instead of one per image).
    ssum_ref[0] = jnp.sum(s_acc, keepdims=True)


def ssim_loss(X, Y, data_range, *, win_size=7, k1=0.01, k2=0.03):
    """Pallas TPU implementation of fastmri SSIMLoss.forward.

    X, Y: (N, 1, H, W) float arrays.  data_range: (N,) float array.
    Returns scalar 1 - mean(SSIM map), float32.
    """
    N, C, H, W = X.shape
    assert C == 1, "SSIMLoss conv weight has a single input channel"
    assert H >= win_size and W >= win_size
    oh, ow = H - win_size + 1, W - win_size + 1

    x = X.reshape(N, H, W).astype(jnp.float32)
    y = Y.reshape(N, H, W).astype(jnp.float32)
    dr = data_range.reshape(N).astype(jnp.float32)

    # Batch-block size: amortize per-grid-step overhead while keeping the
    # in-kernel footprint (~20 f32 (H,W)-sized live values per image) bounded.
    per_img_bytes = 20 * H * W * 4
    nb = int(max(1, min(N, 8, (8 * 1024 * 1024) // per_img_bytes)))
    G = -(-N // nb)                 # ceil
    n_pad = G * nb
    mask_tail = n_pad != N
    if mask_tail:
        pad = n_pad - N
        x = jnp.concatenate([x, jnp.zeros((pad, H, W), jnp.float32)], axis=0)
        y = jnp.concatenate([y, jnp.zeros((pad, H, W), jnp.float32)], axis=0)
        dr = jnp.concatenate([dr, jnp.ones((pad,), jnp.float32)], axis=0)

    # Banded matrices for the separable box filter (built once, VMEM-resident).
    ri = jnp.arange(oh, dtype=jnp.int32)[:, None]
    hc = jnp.arange(H, dtype=jnp.int32)[None, :]
    brow = ((hc >= ri) & (hc < ri + win_size)).astype(jnp.float32)      # (oh, H)
    wr = jnp.arange(W, dtype=jnp.int32)[:, None]
    cc = jnp.arange(ow, dtype=jnp.int32)[None, :]
    bcol = ((wr >= cc) & (wr < cc + win_size)).astype(jnp.float32)
    bcol = bcol / jnp.float32(win_size * win_size)                      # (W, ow)

    kernel = functools.partial(
        _ssim_kernel, nb=nb, h=H, w=W, win=win_size,
        k1=float(k1), k2=float(k2), n_valid=N, mask_tail=mask_tail)

    block_sums = pl.pallas_call(
        kernel,
        out_shape=jax.ShapeDtypeStruct((G, 1, 1), jnp.float32),
        grid=(G,),
        in_specs=[
            pl.BlockSpec(memory_space=pltpu.MemorySpace.SMEM),   # data_range
            pl.BlockSpec((oh, H), lambda g: (0, 0)),             # row band (resident)
            pl.BlockSpec((W, ow), lambda g: (0, 0)),             # col band (resident)
            pl.BlockSpec((nb, H, W), lambda g: (g, 0, 0)),       # X batch-block
            pl.BlockSpec((nb, H, W), lambda g: (g, 0, 0)),       # Y batch-block
        ],
        out_specs=pl.BlockSpec((1, 1, 1), lambda g: (g, 0, 0)),
        compiler_params=pltpu.CompilerParams(
            dimension_semantics=("parallel",),
            vmem_limit_bytes=64 * 1024 * 1024),
    )(dr, brow, bcol, x, y)

    mean_s = jnp.sum(block_sums) / jnp.float32(N * oh * ow)
    return (1.0 - mean_s).astype(jnp.float32)


def _ssim_loss_reference(X, Y, data_range, *, win_size=7, k1=0.01, k2=0.03):
    """Pure-JAX reference (lax.conv at HIGHEST precision) for correctness."""
    w = jnp.ones((1, 1, win_size, win_size), jnp.float32) / (win_size ** 2)
    np_ = win_size ** 2
    cov_norm = np_ / (np_ - 1.0)
    dr = data_range[:, None, None, None].astype(jnp.float32)
    c1 = (k1 * dr) ** 2
    c2 = (k2 * dr) ** 2

    def conv(z):
        return jax.lax.conv_general_dilated(
            z.astype(jnp.float32), w, window_strides=(1, 1), padding="VALID",
            dimension_numbers=("NCHW", "OIHW", "NCHW"),
            precision=jax.lax.Precision.HIGHEST)

    ux, uy = conv(X), conv(Y)
    uxx, uyy, uxy = conv(X * X), conv(Y * Y), conv(X * Y)
    vx = cov_norm * (uxx - ux * ux)
    vy = cov_norm * (uyy - uy * uy)
    vxy = cov_norm * (uxy - ux * uy)
    a1, a2 = 2 * ux * uy + c1, 2 * vxy + c2
    b1, b2 = ux ** 2 + uy ** 2 + c1, vx + vy + c2
    s = a1 * a2 / (b1 * b2)
    return 1.0 - jnp.mean(s)


if __name__ == "__main__":
    key = jax.random.PRNGKey(0)
    kx, ky, kd = jax.random.split(key, 3)

    # Primary check (module's intended layout: N, 1, H, W).
    N, C, H, W = 2, 1, 16, 16
    X = jax.random.uniform(kx, (N, C, H, W), dtype=jnp.float32)
    Y = jax.random.uniform(ky, (N, C, H, W), dtype=jnp.float32)
    data_range = jax.random.uniform(kd, (N,), dtype=jnp.float32) + 0.5

    out = jax.block_until_ready(ssim_loss(X, Y, data_range))
    ref = jax.block_until_ready(_ssim_loss_reference(X, Y, data_range))
    assert jnp.allclose(out, ref, rtol=1e-5, atol=1e-5), (out, ref)

    # Secondary check: N not a multiple of the batch-block size (exercises the
    # zero-pad + tail-mask path, nb=8 -> grid of 2).
    N2 = 9
    X2 = jax.random.uniform(kx, (N2, 1, H, W), dtype=jnp.float32)
    Y2 = jax.random.uniform(ky, (N2, 1, H, W), dtype=jnp.float32)
    dr2 = jax.random.uniform(kd, (N2,), dtype=jnp.float32) + 0.5

    out2 = jax.block_until_ready(ssim_loss(X2, Y2, dr2))
    ref2 = jax.block_until_ready(_ssim_loss_reference(X2, Y2, dr2))
    assert jnp.allclose(out2, ref2, rtol=1e-5, atol=1e-5), (out2, ref2)

    print("KERNEL_OK")
</pallas_src>

<mosaic_0001>
module attributes {stable_mosaic.version = 11 : i64} {
  func.func @_ssim_kernel(%arg0: i32, %arg1: memref<2xf32, #tpu.memory_space<smem>>, %arg2: memref<10x16xf32, #tpu.memory_space<vmem>>, %arg3: memref<16x10xf32, #tpu.memory_space<vmem>>, %arg4: memref<2x16x16xf32, #tpu.memory_space<vmem>>, %arg5: memref<2x16x16xf32, #tpu.memory_space<vmem>>, %arg6: memref<1x1x1xf32, #tpu.memory_space<vmem>>) attributes {dimension_semantics = [#tpu.dimension_semantics<parallel>], iteration_bounds = array<i64: 1>, scalar_prefetch = 0 : i64, scratch_operands = 0 : i64, tpu.core_type = #tpu.core_type<tc>, window_params = [{transform_indices = @transform_0, window_bounds = array<i64: 2>}, {pipeline_mode = #tpu.pipeline_mode<synchronous>, transform_indices = @transform_1, window_bounds = array<i64: 10, 16>}, {pipeline_mode = #tpu.pipeline_mode<synchronous>, transform_indices = @transform_2, window_bounds = array<i64: 16, 10>}, {transform_indices = @transform_3, window_bounds = array<i64: 2, 16, 16>}, {transform_indices = @transform_4, window_bounds = array<i64: 2, 16, 16>}, {transform_indices = @transform_5, window_bounds = array<i64: 1, 1, 1>}]} {
    %c0 = arith.constant 0 : index
    %c0_0 = arith.constant 0 : index
    %0 = vector.load %arg2[%c0, %c0_0] : memref<10x16xf32, #tpu.memory_space<vmem>>, vector<10x16xf32>
    %c0_1 = arith.constant 0 : index
    %c0_2 = arith.constant 0 : index
    %1 = vector.load %arg3[%c0_1, %c0_2] : memref<16x10xf32, #tpu.memory_space<vmem>>, vector<16x10xf32>
    %c0_3 = arith.constant 0 : index
    %c0_4 = arith.constant 0 : index
    %c0_5 = arith.constant 0 : index
    %2 = vector.load %arg4[%c0_3, %c0_4, %c0_5] : memref<2x16x16xf32, #tpu.memory_space<vmem>>, vector<2x16x16xf32>
    %c0_6 = arith.constant 0 : index
    %c0_7 = arith.constant 0 : index
    %c0_8 = arith.constant 0 : index
    %3 = vector.load %arg5[%c0_6, %c0_7, %c0_8] : memref<2x16x16xf32, #tpu.memory_space<vmem>>, vector<2x16x16xf32>
    %4 = vector.shape_cast %2 : vector<2x16x16xf32> to vector<32x16xf32>
    %cst = arith.constant dense<0.000000e+00> : vector<32x10xf32>
    %5 = tpu.matmul %4, %1, %cst {dimension_numbers = #tpu.dot_dimension_numbers<[1], [0], [0], [1], [0, 0, 1, 1], [], []>, precision = #tpu.contract_precision<fp32>} : vector<32x16xf32>, vector<16x10xf32>, vector<32x10xf32> -> vector<32x10xf32>
    %6 = vector.extract_strided_slice %5 {offsets = [0, 0], sizes = [16, 10], strides = [1, 1]} : vector<32x10xf32> to vector<16x10xf32>
    %cst_9 = arith.constant dense<0.000000e+00> : vector<10x10xf32>
    %7 = tpu.matmul %0, %6, %cst_9 {dimension_numbers = #tpu.dot_dimension_numbers<[1], [0], [0], [1], [0, 0, 1, 1], [], []>, precision = #tpu.contract_precision<fp32>} : vector<10x16xf32>, vector<16x10xf32>, vector<10x10xf32> -> vector<10x10xf32>
    %8 = vector.extract_strided_slice %5 {offsets = [16, 0], sizes = [16, 10], strides = [1, 1]} : vector<32x10xf32> to vector<16x10xf32>
    %cst_10 = arith.constant dense<0.000000e+00> : vector<10x10xf32>
    %9 = tpu.matmul %0, %8, %cst_10 {dimension_numbers = #tpu.dot_dimension_numbers<[1], [0], [0], [1], [0, 0, 1, 1], [], []>, precision = #tpu.contract_precision<fp32>} : vector<10x16xf32>, vector<16x10xf32>, vector<10x10xf32> -> vector<10x10xf32>
    %10 = vector.shape_cast %3 : vector<2x16x16xf32> to vector<32x16xf32>
    %cst_11 = arith.constant dense<0.000000e+00> : vector<32x10xf32>
    %11 = tpu.matmul %10, %1, %cst_11 {dimension_numbers = #tpu.dot_dimension_numbers<[1], [0], [0], [1], [0, 0, 1, 1], [], []>, precision = #tpu.contract_precision<fp32>} : vector<32x16xf32>, vector<16x10xf32>, vector<32x10xf32> -> vector<32x10xf32>
    %12 = vector.extract_strided_slice %11 {offsets = [0, 0], sizes = [16, 10], strides = [1, 1]} : vector<32x10xf32> to vector<16x10xf32>
    %cst_12 = arith.constant dense<0.000000e+00> : vector<10x10xf32>
    %13 = tpu.matmul %0, %12, %cst_12 {dimension_numbers = #tpu.dot_dimension_numbers<[1], [0], [0], [1], [0, 0, 1, 1], [], []>, precision = #tpu.contract_precision<fp32>} : vector<10x16xf32>, vector<16x10xf32>, vector<10x10xf32> -> vector<10x10xf32>
    %14 = vector.extract_strided_slice %11 {offsets = [16, 0], sizes = [16, 10], strides = [1, 1]} : vector<32x10xf32> to vector<16x10xf32>
    %cst_13 = arith.constant dense<0.000000e+00> : vector<10x10xf32>
    %15 = tpu.matmul %0, %14, %cst_13 {dimension_numbers = #tpu.dot_dimension_numbers<[1], [0], [0], [1], [0, 0, 1, 1], [], []>, precision = #tpu.contract_precision<fp32>} : vector<10x16xf32>, vector<16x10xf32>, vector<10x10xf32> -> vector<10x10xf32>
    %16 = arith.mulf %2, %2 : vector<2x16x16xf32>
    %17 = vector.shape_cast %16 : vector<2x16x16xf32> to vector<32x16xf32>
    %cst_14 = arith.constant dense<0.000000e+00> : vector<32x10xf32>
    %18 = tpu.matmul %17, %1, %cst_14 {dimension_numbers = #tpu.dot_dimension_numbers<[1], [0], [0], [1], [0, 0, 1, 1], [], []>, precision = #tpu.contract_precision<fp32>} : vector<32x16xf32>, vector<16x10xf32>, vector<32x10xf32> -> vector<32x10xf32>
    %19 = vector.extract_strided_slice %18 {offsets = [0, 0], sizes = [16, 10], strides = [1, 1]} : vector<32x10xf32> to vector<16x10xf32>
    %cst_15 = arith.constant dense<0.000000e+00> : vector<10x10xf32>
    %20 = tpu.matmul %0, %19, %cst_15 {dimension_numbers = #tpu.dot_dimension_numbers<[1], [0], [0], [1], [0, 0, 1, 1], [], []>, precision = #tpu.contract_precision<fp32>} : vector<10x16xf32>, vector<16x10xf32>, vector<10x10xf32> -> vector<10x10xf32>
    %21 = vector.extract_strided_slice %18 {offsets = [16, 0], sizes = [16, 10], strides = [1, 1]} : vector<32x10xf32> to vector<16x10xf32>
    %cst_16 = arith.constant dense<0.000000e+00> : vector<10x10xf32>
    %22 = tpu.matmul %0, %21, %cst_16 {dimension_numbers = #tpu.dot_dimension_numbers<[1], [0], [0], [1], [0, 0, 1, 1], [], []>, precision = #tpu.contract_precision<fp32>} : vector<10x16xf32>, vector<16x10xf32>, vector<10x10xf32> -> vector<10x10xf32>
    %23 = arith.mulf %3, %3 : vector<2x16x16xf32>
    %24 = vector.shape_cast %23 : vector<2x16x16xf32> to vector<32x16xf32>
    %cst_17 = arith.constant dense<0.000000e+00> : vector<32x10xf32>
    %25 = tpu.matmul %24, %1, %cst_17 {dimension_numbers = #tpu.dot_dimension_numbers<[1], [0], [0], [1], [0, 0, 1, 1], [], []>, precision = #tpu.contract_precision<fp32>} : vector<32x16xf32>, vector<16x10xf32>, vector<32x10xf32> -> vector<32x10xf32>
    %26 = vector.extract_strided_slice %25 {offsets = [0, 0], sizes = [16, 10], strides = [1, 1]} : vector<32x10xf32> to vector<16x10xf32>
    %cst_18 = arith.constant dense<0.000000e+00> : vector<10x10xf32>
    %27 = tpu.matmul %0, %26, %cst_18 {dimension_numbers = #tpu.dot_dimension_numbers<[1], [0], [0], [1], [0, 0, 1, 1], [], []>, precision = #tpu.contract_precision<fp32>} : vector<10x16xf32>, vector<16x10xf32>, vector<10x10xf32> -> vector<10x10xf32>
    %28 = vector.extract_strided_slice %25 {offsets = [16, 0], sizes = [16, 10], strides = [1, 1]} : vector<32x10xf32> to vector<16x10xf32>
    %cst_19 = arith.constant dense<0.000000e+00> : vector<10x10xf32>
    %29 = tpu.matmul %0, %28, %cst_19 {dimension_numbers = #tpu.dot_dimension_numbers<[1], [0], [0], [1], [0, 0, 1, 1], [], []>, precision = #tpu.contract_precision<fp32>} : vector<10x16xf32>, vector<16x10xf32>, vector<10x10xf32> -> vector<10x10xf32>
    %30 = arith.mulf %2, %3 : vector<2x16x16xf32>
    %31 = vector.shape_cast %30 : vector<2x16x16xf32> to vector<32x16xf32>
    %cst_20 = arith.constant dense<0.000000e+00> : vector<32x10xf32>
    %32 = tpu.matmul %31, %1, %cst_20 {dimension_numbers = #tpu.dot_dimension_numbers<[1], [0], [0], [1], [0, 0, 1, 1], [], []>, precision = #tpu.contract_precision<fp32>} : vector<32x16xf32>, vector<16x10xf32>, vector<32x10xf32> -> vector<32x10xf32>
    %33 = vector.extract_strided_slice %32 {offsets = [0, 0], sizes = [16, 10], strides = [1, 1]} : vector<32x10xf32> to vector<16x10xf32>
    %cst_21 = arith.constant dense<0.000000e+00> : vector<10x10xf32>
    %34 = tpu.matmul %0, %33, %cst_21 {dimension_numbers = #tpu.dot_dimension_numbers<[1], [0], [0], [1], [0, 0, 1, 1], [], []>, precision = #tpu.contract_precision<fp32>} : vector<10x16xf32>, vector<16x10xf32>, vector<10x10xf32> -> vector<10x10xf32>
    %35 = vector.extract_strided_slice %32 {offsets = [16, 0], sizes = [16, 10], strides = [1, 1]} : vector<32x10xf32> to vector<16x10xf32>
    %cst_22 = arith.constant dense<0.000000e+00> : vector<10x10xf32>
    %36 = tpu.matmul %0, %35, %cst_22 {dimension_numbers = #tpu.dot_dimension_numbers<[1], [0], [0], [1], [0, 0, 1, 1], [], []>, precision = #tpu.contract_precision<fp32>} : vector<10x16xf32>, vector<16x10xf32>, vector<10x10xf32> -> vector<10x10xf32>
    %c2_i32 = arith.constant 2 : i32
    %37 = arith.muli %arg0, %c2_i32 : i32
    %c0_i32 = arith.constant 0 : i32
    %38 = arith.addi %37, %c0_i32 : i32
    %39 = arith.index_cast %38 : i32 to index
    %40 = memref.load %arg1[%39] : memref<2xf32, #tpu.memory_space<smem>>
    %cst_23 = arith.constant 0.00999999977 : f32
    %41 = arith.mulf %cst_23, %40 : f32
    %cst_24 = arith.constant 0.00999999977 : f32
    %42 = arith.mulf %cst_24, %40 : f32
    %43 = arith.mulf %41, %42 : f32
    %cst_25 = arith.constant 3.000000e-02 : f32
    %44 = arith.mulf %cst_25, %40 : f32
    %cst_26 = arith.constant 3.000000e-02 : f32
    %45 = arith.mulf %cst_26, %40 : f32
    %46 = arith.mulf %44, %45 : f32
    %47 = arith.mulf %7, %7 : vector<10x10xf32>
    %48 = arith.mulf %13, %13 : vector<10x10xf32>
    %49 = arith.mulf %7, %13 : vector<10x10xf32>
    %50 = arith.subf %20, %47 : vector<10x10xf32>
    %cst_27 = arith.constant 1.02083337 : f32
    %51 = vector.broadcast %cst_27 : f32 to vector<10x10xf32>
    %52 = arith.mulf %51, %50 : vector<10x10xf32>
    %53 = arith.subf %27, %48 : vector<10x10xf32>
    %cst_28 = arith.constant 1.02083337 : f32
    %54 = vector.broadcast %cst_28 : f32 to vector<10x10xf32>
    %55 = arith.mulf %54, %53 : vector<10x10xf32>
    %56 = arith.subf %34, %49 : vector<10x10xf32>
    %cst_29 = arith.constant 1.02083337 : f32
    %57 = vector.broadcast %cst_29 : f32 to vector<10x10xf32>
    %58 = arith.mulf %57, %56 : vector<10x10xf32>
    %cst_30 = arith.constant 2.000000e+00 : f32
    %59 = vector.broadcast %cst_30 : f32 to vector<10x10xf32>
    %60 = arith.mulf %59, %49 : vector<10x10xf32>
    %61 = vector.broadcast %43 : f32 to vector<10x10xf32>
    %62 = arith.addf %60, %61 : vector<10x10xf32>
    %cst_31 = arith.constant 2.000000e+00 : f32
    %63 = vector.broadcast %cst_31 : f32 to vector<10x10xf32>
    %64 = arith.mulf %63, %58 : vector<10x10xf32>
    %65 = vector.broadcast %46 : f32 to vector<10x10xf32>
    %66 = arith.addf %64, %65 : vector<10x10xf32>
    %67 = arith.addf %47, %48 : vector<10x10xf32>
    %68 = vector.broadcast %43 : f32 to vector<10x10xf32>
    %69 = arith.addf %67, %68 : vector<10x10xf32>
    %70 = arith.addf %52, %55 : vector<10x10xf32>
    %71 = vector.broadcast %46 : f32 to vector<10x10xf32>
    %72 = arith.addf %70, %71 : vector<10x10xf32>
    %73 = arith.mulf %62, %66 : vector<10x10xf32>
    %74 = arith.mulf %69, %72 : vector<10x10xf32>
    %75 = tpu.reciprocal %74 : vector<10x10xf32> -> vector<10x10xf32>
    %76 = arith.mulf %73, %75 : vector<10x10xf32>
    %c2_i32_32 = arith.constant 2 : i32
    %77 = arith.muli %arg0, %c2_i32_32 : i32
    %c1_i32 = arith.constant 1 : i32
    %78 = arith.addi %77, %c1_i32 : i32
    %79 = arith.index_cast %78 : i32 to index
    %80 = memref.load %arg1[%79] : memref<2xf32, #tpu.memory_space<smem>>
    %cst_33 = arith.constant 0.00999999977 : f32
    %81 = arith.mulf %cst_33, %80 : f32
    %cst_34 = arith.constant 0.00999999977 : f32
    %82 = arith.mulf %cst_34, %80 : f32
    %83 = arith.mulf %81, %82 : f32
    %cst_35 = arith.constant 3.000000e-02 : f32
    %84 = arith.mulf %cst_35, %80 : f32
    %cst_36 = arith.constant 3.000000e-02 : f32
    %85 = arith.mulf %cst_36, %80 : f32
    %86 = arith.mulf %84, %85 : f32
    %87 = arith.mulf %9, %9 : vector<10x10xf32>
    %88 = arith.mulf %15, %15 : vector<10x10xf32>
    %89 = arith.mulf %9, %15 : vector<10x10xf32>
    %90 = arith.subf %22, %87 : vector<10x10xf32>
    %cst_37 = arith.constant 1.02083337 : f32
    %91 = vector.broadcast %cst_37 : f32 to vector<10x10xf32>
    %92 = arith.mulf %91, %90 : vector<10x10xf32>
    %93 = arith.subf %29, %88 : vector<10x10xf32>
    %cst_38 = arith.constant 1.02083337 : f32
    %94 = vector.broadcast %cst_38 : f32 to vector<10x10xf32>
    %95 = arith.mulf %94, %93 : vector<10x10xf32>
    %96 = arith.subf %36, %89 : vector<10x10xf32>
    %cst_39 = arith.constant 1.02083337 : f32
    %97 = vector.broadcast %cst_39 : f32 to vector<10x10xf32>
    %98 = arith.mulf %97, %96 : vector<10x10xf32>
    %cst_40 = arith.constant 2.000000e+00 : f32
    %99 = vector.broadcast %cst_40 : f32 to vector<10x10xf32>
    %100 = arith.mulf %99, %89 : vector<10x10xf32>
    %101 = vector.broadcast %83 : f32 to vector<10x10xf32>
    %102 = arith.addf %100, %101 : vector<10x10xf32>
    %cst_41 = arith.constant 2.000000e+00 : f32
    %103 = vector.broadcast %cst_41 : f32 to vector<10x10xf32>
    %104 = arith.mulf %103, %98 : vector<10x10xf32>
    %105 = vector.broadcast %86 : f32 to vector<10x10xf32>
    %106 = arith.addf %104, %105 : vector<10x10xf32>
    %107 = arith.addf %87, %88 : vector<10x10xf32>
    %108 = vector.broadcast %83 : f32 to vector<10x10xf32>
    %109 = arith.addf %107, %108 : vector<10x10xf32>
    %110 = arith.addf %92, %95 : vector<10x10xf32>
    %111 = vector.broadcast %86 : f32 to vector<10x10xf32>
    %112 = arith.addf %110, %111 : vector<10x10xf32>
    %113 = arith.mulf %102, %106 : vector<10x10xf32>
    %114 = arith.mulf %109, %112 : vector<10x10xf32>
    %115 = tpu.reciprocal %114 : vector<10x10xf32> -> vector<10x10xf32>
    %116 = arith.mulf %113, %115 : vector<10x10xf32>
    %117 = arith.addf %76, %116 : vector<10x10xf32>
    %118 = vector.shape_cast %117 : vector<10x10xf32> to vector<1x10x10xf32>
    %cst_42 = arith.constant dense<0.000000e+00> : vector<1xf32>
    %119 = vector.multi_reduction <add>, %118, %cst_42 [1, 2] : vector<1x10x10xf32> to vector<1xf32>
    %120 = vector.shape_cast %119 : vector<1xf32> to vector<1x1x1xf32>
    %121 = vector.extract %120[0, 0, 0] : f32 from vector<1x1x1xf32>
    %122 = vector.broadcast %121 : f32 to vector<1x1xf32>
    %c0_43 = arith.constant 0 : index
    %c0_44 = arith.constant 0 : index
    %c0_45 = arith.constant 0 : index
    %123 = vector.load %arg6[%c0_43, %c0_44, %c0_45] : memref<1x1x1xf32, #tpu.memory_space<vmem>>, vector<1x1x1xf32>
    %124 = vector.shape_cast %123 : vector<1x1x1xf32> to vector<1x1xf32>
    %125 = vector.shape_cast %122 : vector<1x1xf32> to vector<1x1x1xf32>
    tpu.vector_store %arg6[%c0_43, %c0_44, %c0_45], %125 {strides = array<i32>} : memref<1x1x1xf32, #tpu.memory_space<vmem>>, vector<1x1x1xf32>,
    return
  }
  func.func @transform_0(%arg0: i32) -> i32 {
    %c0_i32 = arith.constant 0 : i32
    %c0_i32_0 = arith.constant 0 : i32
    return %c0_i32 : i32
  }
  func.func @transform_1(%arg0: i32) -> (i32, i32) {
    %c0_i32 = arith.constant 0 : i32
    %c0_i32_0 = arith.constant 0 : i32
    %c0_i32_1 = arith.constant 0 : i32
    return %c0_i32, %c0_i32_0 : i32, i32
  }
  func.func @transform_2(%arg0: i32) -> (i32, i32) {
    %c0_i32 = arith.constant 0 : i32
    %c0_i32_0 = arith.constant 0 : i32
    %c0_i32_1 = arith.constant 0 : i32
    return %c0_i32, %c0_i32_0 : i32, i32
  }
  func.func @transform_3(%arg0: i32) -> (i32, i32, i32) {
    %c0_i32 = arith.constant 0 : i32
    %c0_i32_0 = arith.constant 0 : i32
    %c0_i32_1 = arith.constant 0 : i32
    return %arg0, %c0_i32, %c0_i32_0 : i32, i32, i32
  }
  func.func @transform_4(%arg0: i32) -> (i32, i32, i32) {
    %c0_i32 = arith.constant 0 : i32
    %c0_i32_0 = arith.constant 0 : i32
    %c0_i32_1 = arith.constant 0 : i32
    return %arg0, %c0_i32, %c0_i32_0 : i32, i32, i32
  }
  func.func @transform_5(%arg0: i32) -> (i32, i32, i32) {
    %c0_i32 = arith.constant 0 : i32
    %c0_i32_0 = arith.constant 0 : i32
    %c0_i32_1 = arith.constant 0 : i32
    return %arg0, %c0_i32, %c0_i32_0 : i32, i32, i32
  }
}

</mosaic_0001>

<bundles_post_ra>
// kernel: tpu_custom_call.1
= control target key start
LH: loop header
LB: loop body
LE: loop exit
PB: predicated region body
PF: predicated region fallthrough
CT: control target
= control target key end

     0   :  { %10 = vsyncpa [#allocation5], 0  ;;  %s4496_s0 = inlined_call_operand.hbm [shape: f32[2], index: 0, kind: input, shape index: {}]   ;;  %s4497_s1 = inlined_call_operand.hbm [shape: f32[10,16], index: 1, kind: input, shape index: {}]   ;;  %s4498_s2 = inlined_call_operand.hbm [shape: f32[16,10], index: 2, kind: input, shape index: {}]   ;;  %s4499_s3 = inlined_call_operand.hbm [shape: f32[2,16,16], index: 3, kind: input, shape index: {}]   ;;  %s4500_s4 = inlined_call_operand.hbm [shape: f32[2,16,16], index: 4, kind: input, shape index: {}]   ;;  %s4501_s5 = inlined_call_operand.hbm [shape: f32[1,1,1], index: 5, kind: output, shape index: {}]  }
   0x1   :  { %11 = vsyncpa [#allocation3], 0 }
   0x2   :  { %12 = vsyncpa [#allocation8], 0 }
   0x3   :  { %13 = vsyncpa [#allocation11], 0 }
   0x4   :  { %14 = vsyncpa [#allocation4], 0  ;;  %s41_s20 = sshll.u32 %s4498_s2, 4  ;;  %s3708_s21 = smov [#allocation7]   ;;  %s42_s20 = int_to_ptr.hbm [resolvable:$true] %s41_s20 }
   0x5   :  { %s43_s22 = sshll.u32 %s3708_s21, 4  ;;  %s20_s25 = sshll.u32 %s4496_s0, 4  ;;  %s44_s22 = int_to_ptr.vmem [resolvable:$true] %s43_s22  ;;  %s21_s25 = int_to_ptr.hbm [resolvable:$true] %s20_s25 }
   0x6   :  { %s3709_s26 = smov 128   ;;  %s3710_s27 = smov 8  }
   0x7   :  { %49 = dma.hbm_to_vmem [thread:$0]  %s42_s20, 256, %s44_s22, [#allocation8], %s3709_s26, %s3709_s26, %s3710_s27  }
   0x8   :  { %s3711_s28 = smov [#allocation2]   ;;  %s28_s6 = sshll.u32 %s4497_s1, 4  ;;  %s29_s6 = int_to_ptr.hbm [resolvable:$true] %s28_s6 }
   0x9   :  { %23 = dma.hbm_to_smem %s21_s25, 16, %s3711_s28, [#allocation5]  }
   0xa   :  { %s3712_s2 = smov [#allocation6]   ;;  %s54_s10 = sshll.u32 %s4499_s3, 4  ;;  %s55_s10 = int_to_ptr.hbm [resolvable:$true] %s54_s10 }
   0xb   :  { %s30_s7 = sshll.u32 %s3712_s2, 4  ;;  %s3713_s0 = smov [#allocation9]   ;;  %s31_s7 = int_to_ptr.vmem [resolvable:$true] %s30_s7 }
   0xc   :  { %36 = dma.hbm_to_vmem [thread:$0]  %s29_s6, 256, %s31_s7, [#allocation3], %s3709_s26, %s3709_s26, %s3710_s27  }
   0xd   :  { %s56_s11 = sshll.u32 %s3713_s0, 4  ;;  %s67_s14 = sshll.u32 %s4500_s4, 4  ;;  %s57_s11 = int_to_ptr.vmem [resolvable:$true] %s56_s11  ;;  %s68_s14 = int_to_ptr.hbm [resolvable:$true] %s67_s14 }
   0xe   :  { %62 = dma.hbm_to_vmem [thread:$0]  %s55_s10, 512, %s57_s11, [#allocation8], %s3709_s26, %s3709_s26, %s3710_s27  }
   0xf   :  { %s3714_s1 = smov [#allocation10]  }
  0x10   :  { %s69_s15 = sshll.u32 %s3714_s1, 4  ;;  %s70_s15 = int_to_ptr.vmem [resolvable:$true] %s69_s15 }
  0x11   :  { %75 = dma.hbm_to_vmem [thread:$0]  %s68_s14, 512, %s70_s15, [#allocation11], %s3709_s26, %s3709_s26, %s3710_s27  }
  0x12   :  { %3698 = dma.done.wait [#allocation5], 16  }
  0x13   :  { %3699 = vsyncadd [#allocation5], 4294967280 }
  0x14   :  { %3700 = dma.done.wait [#allocation3], 256  }
  0x15   :  { %3701 = vsyncadd [#allocation3], 4294967040 }
  0x16   :  { %3702 = dma.done.wait [#allocation8], 768  }
  0x17   :  { %3703 = vsyncadd [#allocation8], 4294966528 }
  0x18   :  { %3704 = dma.done.wait [#allocation11], 512  }
  0x19   :  { %3705 = vsyncadd [#allocation11], 4294966784 }
  0x1a   :  { %96 = sfence }
  0x1b   :  { %v100_v0 = vld [vmem:[#allocation7 + $0x8] sm:$0xff]  ;;  %v99_v1 = vld [vmem:[#allocation7] sm:$0xff]  ;;  %v3761_v2 = vld [vmem:[#allocation9] sm:$0xff]  ;;  %vm109_vm0 = vcmask 130048   ;;  %s4297_s3 = sld [smem:[#allocation2]]  ;;  %s3715_s24 = smov [#allocation12]  }
  0x1c   :  { %v3763_v3 = vand.u32 4294901760, %v100_v0  ;;  %v3765_v4 = vand.u32 4294901760, %v99_v1  ;;  %v111_v5 = vsel %vm109_vm0, %v3761_v2, 0  ;;  %v3769_v6 = vld [vmem:[#allocation9 + $0x8] sm:$0xff]  ;;  %v3789_v15 = vld [vmem:[#allocation9 + $0x10] sm:$0xff]  ;;  %v3804_v27 = vld [vmem:[#allocation9 + $0x18] sm:$0xff] }
  0x1d   :  { %v140_v7 = vand.u32 4294901760, %v111_v5  ;;  %v114_v8 = vsel %vm109_vm0, %v3769_v6, 0  ;;  %v117_v22 = vsel %vm109_vm0, %v3789_v15, 0  ;;  %v120_v30 = vsel %vm109_vm0, %v3804_v27, 0  ;;  %v97_v50 = vld [vmem:[#allocation6] sm:$0xff]  ;;  %s4310_s4 = sld [smem:[#allocation2 + $0x1]] }
  0x1e   :  { %v3774_v9 = vsub.f32 %v100_v0, %v3763_v3  ;;  %137 = vmatpush.msra.mxu0 %v3763_v3  ;;  %v3778_v10 = vsub.f32 %v99_v1, %v3765_v4  ;;  %272 = vmatpush.msra.mxu3 %v3763_v3  ;;  %v148_v11 = vand.u32 4294901760, %v114_v8  ;;  %v156_v25 = vand.u32 4294901760, %v117_v22  ;;  %v98_v60 = vld [vmem:[#allocation6 + $0x8] sm:$0x3]  ;;  %s3524_s25 = sshll.u32 %s3715_s24, 4  ;;  %s3526_s28 = sshll.u32 %s4501_s5, 4  ;;  %s3525_s25 = int_to_ptr.vmem [resolvable:$true] %s3524_s25  ;;  %s3527_s28 = int_to_ptr.hbm [resolvable:$true] %s3526_s28 }
  0x1f   :  { %v141_v12 = vsub.f32 %v111_v5, %v140_v7  ;;  %v164_v33 = vand.u32 4294901760, %v120_v30  ;;  %v375_v54 = vsel %vm109_vm0, %v97_v50, 0  ;;  %v378_v5 = vsel %vm109_vm0, %v98_v60, 0 }
  0x20   :  { %232 = vmatpush.msra.mxu2 %v3774_v9  ;;  %139 = vmatpush.msra.mxu0 %v3765_v4  ;;  %v3784_v13 = vand.u32 4294901760, %v3774_v9  ;;  %v3787_v14 = vand.u32 4294901760, %v3778_v10  ;;  %v149_v17 = vsub.f32 %v114_v8, %v148_v11  ;;  %v157_v29 = vsub.f32 %v117_v22, %v156_v25 }
  0x21   :  { %274 = vmatpush.msra.mxu3 %v3765_v4  ;;  %v142_v16 = vand.u32 4294901760, %v141_v12  ;;  %v165_v35 = vsub.f32 %v120_v30, %v164_v33  ;;  %v3814_v55 = vand.u32 4294901760, %v375_v54  ;;  %s3352_s16 = smul.f32 0.03, %s4297_s3 }
  0x22   :  { %235 = vmatpush.msra.mxu2 %v3778_v10  ;;  %v190_v18 = vsub.f32 %v3774_v9, %v3784_v13  ;;  %v196_v19 = vsub.f32 %v3778_v10, %v3787_v14  ;;  %v150_v21 = vand.u32 4294901760, %v149_v17  ;;  %317 = vmatpush.msrb.mxu0 %v3784_v13  ;;  %v158_v32 = vand.u32 4294901760, %v157_v29  ;;  %s3350_s18 = smul.f32 0.01, %s4297_s3 }
  0x23   :  { %238 = vmatmul.f32.vlgmr.msra.gmra.mxu2 %v141_v12  ;;  %v143_v20 = vsub.f32 %v141_v12, %v142_v16  ;;  %278 = vmatmul.f32.vlgmr.msra.gmra.mxu3 %v142_v16  ;;  %v166_v37 = vand.u32 4294901760, %v165_v35  ;;  %v3817_v63 = vsub.f32 %v375_v54, %v3814_v55  ;;  %s3428_s17 = smul.f32 0.03, %s4310_s4 }
  0x24   :  { %v3799_v23 = vand.u32 4294901760, %v190_v18  ;;  %v3801_v24 = vand.u32 4294901760, %v196_v19  ;;  %321 = vmatpush.msrb.mxu0 %v3787_v14  ;;  %v151_v28 = vsub.f32 %v149_v17, %v150_v21  ;;  %v159_v34 = vsub.f32 %v157_v29, %v158_v32  ;;  %s3426_s19 = smul.f32 0.01, %s4310_s4 }
  0x25   :  { %v144_v26 = vand.u32 4294901760, %v143_v20  ;;  %v167_v38 = vsub.f32 %v165_v35, %v166_v37  ;;  %v3821_v8 = vand.u32 4294901760, %v3817_v63  ;;  %s3353_s20 = smul.f32 %s3352_s16, %s3352_s16 }
  0x26   :  { %192 = vmatpush.msra.mxu1 %v3799_v23  ;;  %v152_v31 = vand.u32 4294901760, %v151_v28  ;;  %v160_v36 = vand.u32 4294901760, %v159_v34  ;;  %s3429_s21 = smul.f32 %s3428_s17, %s3428_s17 }
  0x27   :  { %145 = vmatmul.f32.vlgmr.msra.gmra.mxu0 %v144_v26  ;;  %v168_v39 = vand.u32 4294901760, %v167_v38  ;;  %v401_v22 = vsub.f32 %v3817_v63, %v3821_v8  ;;  %s3351_s22 = smul.f32 %s3350_s18, %s3350_s18 }
  0x28   :  { %198 = vmatpush.msra.mxu1 %v3801_v24  ;;  %s3427_s23 = smul.f32 %s3426_s19, %s3426_s19 }
  0x29   :  { %200 = vmatmul.f32.vlgmr.msra.gmra.mxu1 %v140_v7 }
  0x2a   :  { %354 = vmatpush.msrb.mxu1 %v3763_v3 }
  0x2b   :  { %243 = vmatmul.f32.gmra.mxu2 %v149_v17  ;;  %284 = vmatmul.f32.gmra.mxu3 %v150_v21 }
  0x2c   :  { %356 = vmatpush.msrb.mxu1 %v3765_v4 }
  0x2f   :  { %153 = vmatmul.f32.gmra.mxu0 %v152_v31 }
  0x31   :  { %204 = vmatmul.f32.gmra.mxu1 %v148_v11 }
  0x33   :  { %248 = vmatmul.f32.gmra.mxu2 %v157_v29  ;;  %290 = vmatmul.f32.gmra.mxu3 %v158_v32  ;;  %v3830_v32 = vand.u32 4294901760, %v401_v22 }
  0x37   :  { %161 = vmatmul.f32.gmra.mxu0 %v160_v36 }
  0x39   :  { %208 = vmatmul.f32.gmra.mxu1 %v156_v25 }
  0x3b   :  { %253 = vmatmul.f32.gmra.mxu2 %v165_v35  ;;  %296 = vmatmul.f32.gmra.mxu3 %v166_v37 }
  0x3f   :  { %169 = vmatmul.f32.gmra.mxu0 %v168_v39 }
  0x41   :  { %212 = vmatmul.f32.gmra.mxu1 %v164_v33 }
  0x47   :  { %323 = vmatmul.f32.vlgmr.msrb.gmra.mxu0 %v140_v7 }
  0x49   :  { %358 = vmatmul.f32.vlgmr.msrb.gmra.mxu1 %v140_v7 }
  0x4f   :  { %327 = vmatmul.f32.gmra.mxu0 %v148_v11 }
  0x51   :  { %362 = vmatmul.f32.gmra.mxu1 %v148_v11  ;;  %v3823_v11 = vand.u32 4294901760, %v378_v5 }
  0x57   :  { %331 = vmatmul.f32.gmra.mxu0 %v156_v25 }
  0x59   :  { %366 = vmatmul.f32.gmra.mxu1 %v156_v25  ;;  %v3828_v25 = vsub.f32 %v378_v5, %v3823_v11 }
  0x5f   :  { %335 = vmatmul.f32.gmra.mxu0 %v164_v33 }
  0x61   :  { %370 = vmatmul.f32.gmra.mxu1 %v164_v33  ;;  %v3833_v33 = vand.u32 4294901760, %v3828_v25 }
  0xa4   :  { %v146_v40 = vpop.f32.mrf.mxu0 }
  0xa6   :  { %v201_v41 = vpop.f32.mrf.mxu1  ;;  %v239_v45 = vpop.f32.mrf.mxu2 }
  0xa7   :  { %v279_v47 = vpop.f32.mrf.mxu3  ;;  %v202_v48 = vadd.f32 %v201_v41, %v146_v40 }
  0xa9   :  { %v240_v52 = vadd.f32 %v239_v45, %v202_v48 }
  0xab   :  { %v280_v56 = vadd.f32 %v279_v47, %v240_v52 }
  0xac   :  { %v154_v42 = vpop.f32.mrf.mxu0 }
  0xae   :  { %v205_v43 = vpop.f32.mrf.mxu1  ;;  %v244_v53 = vpop.f32.mrf.mxu2 }
  0xaf   :  { %v206_v57 = vadd.f32 %v205_v43, %v154_v42  ;;  %v285_v58 = vpop.f32.mrf.mxu3  ;;  %v409_v43 = vsub.f32 %v3828_v25, %v3833_v33 }
  0xb1   :  { %v245_v0 = vadd.f32 %v244_v53, %v206_v57 }
  0xb3   :  { %v286_v12 = vadd.f32 %v285_v58, %v245_v0 }
  0xb4   :  { %v162_v44 = vpop.f32.mrf.mxu0 }
  0xb6   :  { %v209_v46 = vpop.f32.mrf.mxu1  ;;  %v249_v7 = vpop.f32.mrf.mxu2 }
  0xb7   :  { %v210_v16 = vadd.f32 %v209_v46, %v162_v44  ;;  %v291_v20 = vpop.f32.mrf.mxu3 }
  0xb9   :  { %v250_v26 = vadd.f32 %v249_v7, %v210_v16  ;;  %v3854_v16 = vld [vmem:[#allocation10 + $0x8] sm:$0xff] }
  0xbb   :  { %v292_v34 = vadd.f32 %v291_v20, %v250_v26  ;;  %v764_v20 = vsel %vm109_vm0, %v3854_v16, 0  ;;  %v3873_v26 = vld [vmem:[#allocation10 + $0x10] sm:$0xff] }
  0xbc   :  { %v170_v49 = vpop.f32.mrf.mxu0  ;;  %v798_v22 = vand.u32 4294901760, %v764_v20 }
  0xbe   :  { %v213_v51 = vpop.f32.mrf.mxu1  ;;  %v254_v35 = vpop.f32.mrf.mxu2 }
  0xbf   :  { %v214_v31 = vadd.f32 %v213_v51, %v170_v49  ;;  %v297_v47 = vpop.f32.mrf.mxu3  ;;  %v3839_v49 = vand.u32 4294901760, %v409_v43 }
  0xc1   :  { %v255_v41 = vadd.f32 %v254_v35, %v214_v31 }
  0xc3   :  { %v298_v50 = vadd.f32 %v297_v47, %v255_v41 }
  0xc4   :  { %v324_v59 = vpop.f32.mrf.mxu0 }
  0xc5   :  { %v325_v61 = vadd.f32 %v324_v59, %v280_v56  ;;  %v3845_v59 = vld [vmem:[#allocation10] sm:$0xff] }
  0xc6   :  { %v359_v62 = vpop.f32.mrf.mxu1  ;;  %v761_v0 = vsel %vm109_vm0, %v3845_v59, 0 }
  0xc7   :  { %v360_v1 = vadd.f32 %v359_v62, %v325_v61  ;;  %v3851_v5 = vand.u32 4294901760, %v761_v0 }
  0xc9   :  { %v396_v17 = vand.u32 4294901760, %v360_v1 }
  0xcb   :  { %v436_v28 = vsub.f32 %v360_v1, %v396_v17 }
  0xcc   :  { %v328_v18 = vpop.f32.mrf.mxu0 }
  0xcd   :  { %v329_v19 = vadd.f32 %v328_v18, %v286_v12  ;;  %v437_v37 = vand.u32 4294901760, %v436_v28  ;;  %v3861_v18 = vsub.f32 %v761_v0, %v3851_v5 }
  0xce   :  { %v363_v21 = vpop.f32.mrf.mxu1 }
  0xcf   :  { %v364_v29 = vadd.f32 %v363_v21, %v329_v19  ;;  %v438_v46 = vsub.f32 %v436_v28, %v437_v37  ;;  %v792_v21 = vand.u32 4294901760, %v3861_v18 }
  0xd1   :  { %v394_v30 = vand.u32 4294901760, %v364_v29  ;;  %v439_v52 = vand.u32 4294901760, %v438_v46 }
  0xd3   :  { %v430_v36 = vsub.f32 %v364_v29, %v394_v30  ;;  %395 = vmatpush.msrb.mxu2 %v394_v30  ;;  %558 = vmatpush.msra.mxu1 %v394_v30  ;;  %v799_v29 = vsub.f32 %v764_v20, %v798_v22 }
  0xd4   :  { %v332_v38 = vpop.f32.mrf.mxu0 }
  0xd5   :  { %v333_v39 = vadd.f32 %v332_v38, %v292_v34  ;;  %397 = vmatpush.msrb.mxu2 %v396_v17  ;;  %560 = vmatpush.msra.mxu1 %v396_v17  ;;  %v431_v40 = vand.u32 4294901760, %v430_v36  ;;  %v800_v34 = vand.u32 4294901760, %v799_v29 }
  0xd6   :  { %v367_v42 = vpop.f32.mrf.mxu1  ;;  %403 = vmatmul.f32.vlgmr.msrb.gmra.mxu2 %v3830_v32  ;;  %562 = vmatmul.f32.vlgmr.msra.gmra.mxu1 %v3814_v55 }
  0xd7   :  { %v368_v44 = vadd.f32 %v367_v42, %v333_v39  ;;  %466 = vmatpush.msra.mxu2 %v430_v36  ;;  %529 = vmatpush.msra.mxu0 %v431_v40  ;;  %v432_v45 = vsub.f32 %v430_v36, %v431_v40  ;;  %v3883_v36 = vld [vmem:[#allocation10 + $0x18] sm:$0xff] }
  0xd8   :  { %v770_v39 = vsel %vm109_vm0, %v3883_v36, 0 }
  0xd9   :  { %469 = vmatpush.msra.mxu2 %v436_v28  ;;  %533 = vmatpush.msra.mxu0 %v437_v37  ;;  %v433_v48 = vand.u32 4294901760, %v432_v45  ;;  %v586_v51 = vand.u32 4294901760, %v368_v44  ;;  %v793_v28 = vsub.f32 %v3861_v18, %v792_v21  ;;  %v801_v37 = vsub.f32 %v799_v29, %v800_v34 }
  0xda   :  { %535 = vmatmul.f32.vlgmr.msra.gmra.mxu0 %v3814_v55  ;;  %v814_v42 = vand.u32 4294901760, %v770_v39 }
  0xdb   :  { %434 = vmatpush.msrb.mxu3 %v433_v48  ;;  %v626_v57 = vsub.f32 %v368_v44, %v586_v51  ;;  %v794_v31 = vand.u32 4294901760, %v793_v28  ;;  %v802_v40 = vand.u32 4294901760, %v801_v37 }
  0xdc   :  { %v336_v53 = vpop.f32.mrf.mxu0  ;;  %v815_v44 = vsub.f32 %v770_v39, %v814_v42 }
  0xdd   :  { %v337_v54 = vadd.f32 %v336_v53, %v298_v50  ;;  %440 = vmatpush.msrb.mxu3 %v439_v52  ;;  %v627_v62 = vand.u32 4294901760, %v626_v57 }
  0xde   :  { %v371_v56 = vpop.f32.mrf.mxu1  ;;  %411 = vmatmul.f32.gmra.mxu2 %v3839_v49  ;;  %442 = vmatmul.f32.vlgmr.msrb.gmra.mxu3 %v3814_v55  ;;  %v816_v46 = vand.u32 4294901760, %v815_v44 }
  0xdf   :  { %v372_v58 = vadd.f32 %v371_v56, %v337_v54  ;;  %496 = vmatpush.msra.mxu3 %v394_v30  ;;  %566 = vmatmul.f32.gmra.mxu1 %v3823_v11  ;;  %v628_v12 = vsub.f32 %v626_v57, %v627_v62  ;;  %v767_v30 = vsel %vm109_vm0, %v3873_v26, 0 }
  0xe0   :  { %v806_v35 = vand.u32 4294901760, %v767_v30  ;;  %v817_v47 = vsub.f32 %v815_v44, %v816_v46 }
  0xe1   :  { %v584_v60 = vand.u32 4294901760, %v372_v58  ;;  %498 = vmatpush.msra.mxu3 %v396_v17  ;;  %v629_v19 = vand.u32 4294901760, %v628_v12 }
  0xe2   :  { %539 = vmatmul.f32.gmra.mxu0 %v3823_v11  ;;  %v807_v38 = vsub.f32 %v767_v30, %v806_v35  ;;  %v818_v48 = vand.u32 4294901760, %v817_v47 }
  0xe3   :  { %v620_v61 = vsub.f32 %v372_v58, %v584_v60  ;;  %585 = vmatpush.msrb.mxu2 %v584_v60  ;;  %686 = vmatpush.msrb.mxu1 %v584_v60 }
  0xe4   :  { %v808_v41 = vand.u32 4294901760, %v807_v38 }
  0xe5   :  { %587 = vmatpush.msrb.mxu2 %v586_v51  ;;  %656 = vmatpush.msrb.mxu0 %v620_v61  ;;  %v621_v1 = vand.u32 4294901760, %v620_v61 }
  0xe6   :  { %688 = vmatpush.msrb.mxu1 %v586_v51  ;;  %446 = vmatmul.f32.gmra.mxu3 %v3823_v11  ;;  %v809_v43 = vsub.f32 %v807_v38, %v808_v41 }
  0xe7   :  { %472 = vmatmul.f32.vlgmr.msra.gmra.mxu2 %v3817_v63  ;;  %659 = vmatpush.msrb.mxu0 %v626_v57  ;;  %v622_v7 = vsub.f32 %v620_v61, %v621_v1 }
  0xe8   :  { %719 = vmatpush.msra.mxu2 %v621_v1  ;;  %692 = vmatmul.f32.vlgmr.msrb.gmra.mxu1 %v3821_v8  ;;  %v810_v45 = vand.u32 4294901760, %v809_v43 }
  0xe9   :  { %v623_v17 = vand.u32 4294901760, %v622_v7  ;;  %787 = vmatpush.msra.mxu0 %v3763_v3  ;;  %842 = vmatpush.msra.mxu1 %v3799_v23 }
  0xea   :  { %723 = vmatpush.msra.mxu2 %v627_v62  ;;  %662 = vmatmul.f32.vlgmr.msrb.gmra.mxu0 %v3817_v63 }
  0xeb   :  { %624 = vmatpush.msrb.mxu3 %v623_v17  ;;  %789 = vmatpush.msra.mxu0 %v3765_v4 }
  0xec   :  { %848 = vmatpush.msra.mxu1 %v3801_v24 }
  0xed   :  { %967 = vmatpush.msrb.mxu0 %v3784_v13  ;;  %630 = vmatpush.msrb.mxu3 %v629_v19 }
  0xee   :  { %1004 = vmatpush.msrb.mxu1 %v3763_v3  ;;  %502 = vmatmul.f32.vlgmr.msra.gmra.mxu3 %v3821_v8 }
  0xef   :  { %971 = vmatpush.msrb.mxu0 %v3787_v14  ;;  %477 = vmatmul.f32.gmra.mxu2 %v3828_v25 }
  0xf0   :  { %748 = vmatpush.msra.mxu3 %v584_v60  ;;  %698 = vmatmul.f32.gmra.mxu1 %v3833_v33 }
  0xf1   :  { %1006 = vmatpush.msrb.mxu1 %v3765_v4 }
  0xf2   :  { %750 = vmatpush.msra.mxu3 %v586_v51  ;;  %667 = vmatmul.f32.gmra.mxu0 %v3828_v25 }
  0xf6   :  { %508 = vmatmul.f32.gmra.mxu3 %v3833_v33 }
  0xf7   :  { %593 = vmatmul.f32.vlgmr.msrb.gmra.mxu2 %v3830_v32 }
  0xf8   :  { %850 = vmatmul.f32.vlgmr.msra.gmra.mxu1 %v3851_v5  ;;  %882 = vmatpush.msrb.mxu2 %v3774_v9 }
  0xfa   :  { %795 = vmatmul.f32.vlgmr.msra.gmra.mxu0 %v794_v31  ;;  %885 = vmatpush.msrb.mxu2 %v3778_v10 }
  0xfe   :  { %632 = vmatmul.f32.vlgmr.msrb.gmra.mxu3 %v3814_v55 }
  0xff   :  { %601 = vmatmul.f32.gmra.mxu2 %v3839_v49  ;;  %922 = vmatpush.msrb.mxu3 %v3763_v3 }
 0x100   :  { %854 = vmatmul.f32.gmra.mxu1 %v798_v22 }
 0x101   :  { %924 = vmatpush.msrb.mxu3 %v3765_v4 }
 0x102   :  { %803 = vmatmul.f32.gmra.mxu0 %v802_v40 }
 0x106   :  { %636 = vmatmul.f32.gmra.mxu3 %v3823_v11 }
 0x107   :  { %725 = vmatmul.f32.vlgmr.msra.gmra.mxu2 %v3814_v55 }
 0x108   :  { %858 = vmatmul.f32.gmra.mxu1 %v806_v35 }
 0x10a   :  { %811 = vmatmul.f32.gmra.mxu0 %v810_v45 }
 0x10e   :  { %752 = vmatmul.f32.vlgmr.msra.gmra.mxu3 %v3814_v55 }
 0x10f   :  { %729 = vmatmul.f32.gmra.mxu2 %v3823_v11 }
 0x110   :  { %862 = vmatmul.f32.gmra.mxu1 %v814_v42 }
 0x112   :  { %819 = vmatmul.f32.gmra.mxu0 %v818_v48 }
 0x116   :  { %756 = vmatmul.f32.gmra.mxu3 %v3823_v11 }
 0x117   :  { %888 = vmatmul.f32.vlgmr.msrb.gmra.mxu2 %v3861_v18 }
 0x118   :  { %1008 = vmatmul.f32.vlgmr.msrb.gmra.mxu1 %v3851_v5 }
 0x11a   :  { %973 = vmatmul.f32.vlgmr.msrb.gmra.mxu0 %v3851_v5 }
 0x11e   :  { %928 = vmatmul.f32.vlgmr.msrb.gmra.mxu3 %v792_v21 }
 0x11f   :  { %893 = vmatmul.f32.gmra.mxu2 %v799_v29 }
 0x120   :  { %1012 = vmatmul.f32.gmra.mxu1 %v798_v22 }
 0x122   :  { %977 = vmatmul.f32.gmra.mxu0 %v798_v22 }
 0x126   :  { %934 = vmatmul.f32.gmra.mxu3 %v800_v34 }
 0x127   :  { %898 = vmatmul.f32.gmra.mxu2 %v807_v38 }
 0x128   :  { %1016 = vmatmul.f32.gmra.mxu1 %v806_v35 }
 0x12a   :  { %981 = vmatmul.f32.gmra.mxu0 %v806_v35 }
 0x12e   :  { %940 = vmatmul.f32.gmra.mxu3 %v808_v41 }
 0x12f   :  { %903 = vmatmul.f32.gmra.mxu2 %v815_v44 }
 0x130   :  { %1020 = vmatmul.f32.gmra.mxu1 %v814_v42 }
 0x132   :  { %985 = vmatmul.f32.gmra.mxu0 %v814_v42 }
 0x136   :  { %946 = vmatmul.f32.gmra.mxu3 %v816_v46 }
 0x153   :  { %v3902_v50 = vpop.f32.mrf.mxu1 }
 0x154   :  { %4502 = vst [vmem:[#allocation18_spill] sm:$0xff] %v3902_v50 }
 0x157   :  { %v3904_v51 = vpop.f32.mrf.mxu0 }
 0x158   :  { %4503 = vst [vmem:[#allocation19_spill] sm:$0xff] %v3904_v51 }
 0x159   :  { %v3906_v52 = vpop.f32.mrf.mxu2 }
 0x15c   :  { %v3908_v53 = vpop.f32.mrf.mxu1 }
 0x15d   :  { %4504 = vst [vmem:[#allocation20_spill] sm:$0xff] %v3908_v53 }
 0x15f   :  { %v3910_v54 = vpop.f32.mrf.mxu0 }
 0x160   :  { %4505 = vst [vmem:[#allocation21_spill] sm:$0xff] %v3910_v54 }
 0x161   :  { %v3912_v56 = vpop.f32.mrf.mxu2  ;;  %v3914_v57 = vpop.f32.mrf.mxu3 }
 0x162   :  { %4506 = vst [vmem:[#allocation22_spill] sm:$0xff] %v3912_v56 }
 0x165   :  { %v3916_v58 = vpop.f32.mrf.mxu1 }
 0x166   :  { %4507 = vst [vmem:[#allocation23_spill] sm:$0xff] %v3916_v58 }
 0x167   :  { %v3918_v60 = vpop.f32.mrf.mxu0 }
 0x169   :  { %v3920_v61 = vpop.f32.mrf.mxu3 }
 0x16a   :  { %4508 = vst [vmem:[#allocation24_spill] sm:$0xff] %v3920_v61  ;;  %v3922_v62 = vpop.f32.mrf.mxu2 }
 0x16d   :  { %v3924_v0 = vpop.f32.mrf.mxu1 }
 0x16e   :  { %4509 = vst [vmem:[#allocation25_spill] sm:$0xff] %v3924_v0 }
 0x16f   :  { %v3926_v1 = vpop.f32.mrf.mxu0 }
 0x170   :  { %4510 = vst [vmem:[#allocation26_spill] sm:$0xff] %v3926_v1 }
 0x171   :  { %v3928_v5 = vpop.f32.mrf.mxu3 }
 0x172   :  { %4511 = vst [vmem:[#allocation27_spill] sm:$0xff] %v3928_v5  ;;  %v3930_v7 = vpop.f32.mrf.mxu2 }
 0x173   :  { %4512 = vst [vmem:[#allocation28_spill] sm:$0xff] %v3930_v7 }
 0x175   :  { %v851_v17 = vpop.f32.mrf.mxu1 }
 0x177   :  { %v796_v12 = vpop.f32.mrf.mxu0 }
 0x178   :  { %v852_v44 = vadd.f32 %v851_v17, %v796_v12 }
 0x179   :  { %v3932_v18 = vpop.f32.mrf.mxu3 }
 0x17a   :  { %4513 = vst [vmem:[#allocation29_spill] sm:$0xff] %v3932_v18  ;;  %v3934_v19 = vpop.f32.mrf.mxu2 }
 0x17d   :  { %v855_v22 = vpop.f32.mrf.mxu1 }
 0x17f   :  { %v804_v20 = vpop.f32.mrf.mxu0 }
 0x180   :  { %v856_v54 = vadd.f32 %v855_v22, %v804_v20 }
 0x181   :  { %v3936_v21 = vpop.f32.mrf.mxu3 }
 0x182   :  { %v3938_v28 = vpop.f32.mrf.mxu2 }
 0x183   :  { %4514 = vst [vmem:[#allocation30_spill] sm:$0xff] %v3938_v28 }
 0x185   :  { %v859_v34 = vpop.f32.mrf.mxu1 }
 0x187   :  { %v812_v29 = vpop.f32.mrf.mxu0 }
 0x189   :  { %v3940_v30 = vpop.f32.mrf.mxu3 }
 0x18a   :  { %4515 = vst [vmem:[#allocation31_spill] sm:$0xff] %v3940_v30  ;;  %v3942_v31 = vpop.f32.mrf.mxu2 }
 0x18b   :  { %4516 = vst [vmem:[#allocation32_spill] sm:$0xff] %v3942_v31 }
 0x18d   :  { %v863_v39 = vpop.f32.mrf.mxu1 }
 0x18f   :  { %v820_v37 = vpop.f32.mrf.mxu0 }
 0x191   :  { %v3944_v35 = vpop.f32.mrf.mxu3 }
 0x192   :  { %4517 = vst [vmem:[#allocation33_spill] sm:$0xff] %v3944_v35  ;;  %v3946_v38 = vpop.f32.mrf.mxu2 }
 0x193   :  { %4518 = vst [vmem:[#allocation34_spill] sm:$0xff] %v3946_v38 }
 0x195   :  { %v1009_v43 = vpop.f32.mrf.mxu1 }
 0x197   :  { %v974_v42 = vpop.f32.mrf.mxu0 }
 0x199   :  { %v3948_v40 = vpop.f32.mrf.mxu3 }
 0x19a   :  { %4519 = vst [vmem:[#allocation35_spill] sm:$0xff] %v3948_v40  ;;  %v889_v41 = vpop.f32.mrf.mxu2  ;;  %v860_v40 = vadd.f32 %v859_v34, %v812_v29 }
 0x19b   :  { %v890_v45 = vadd.f32 %v889_v41, %v852_v44 }
 0x19d   :  { %v1013_v18 = vpop.f32.mrf.mxu1 }
 0x19f   :  { %v978_v0 = vpop.f32.mrf.mxu0 }
 0x1a1   :  { %v929_v46 = vpop.f32.mrf.mxu3 }
 0x1a2   :  { %v894_v47 = vpop.f32.mrf.mxu2  ;;  %v930_v48 = vadd.f32 %v929_v46, %v890_v45 }
 0x1a3   :  { %v895_v35 = vadd.f32 %v894_v47, %v856_v54 }
 0x1a4   :  { %v975_v53 = vadd.f32 %v974_v42, %v930_v48 }
 0x1a5   :  { %v1017_v44 = vpop.f32.mrf.mxu1 }
 0x1a6   :  { %v1010_v1 = vadd.f32 %v1009_v43, %v975_v53 }
 0x1a7   :  { %v982_v58 = vpop.f32.mrf.mxu0 }
 0x1a8   :  { %v1040_v31 = vand.u32 4294901760, %v1010_v1 }
 0x1a9   :  { %v935_v50 = vpop.f32.mrf.mxu3 }
 0x1aa   :  { %v936_v38 = vadd.f32 %v935_v50, %v895_v35  ;;  %v899_v30 = vpop.f32.mrf.mxu2  ;;  %v1080_v7 = vsub.f32 %v1010_v1, %v1040_v31  ;;  %v864_v50 = vadd.f32 %v863_v39, %v820_v37 }
 0x1ab   :  { %v900_v12 = vadd.f32 %v899_v30, %v860_v40 }
 0x1ac   :  { %v979_v28 = vadd.f32 %v978_v0, %v936_v38  ;;  %v1081_v53 = vand.u32 4294901760, %v1080_v7 }
 0x1ad   :  { %v1021_v37 = vpop.f32.mrf.mxu1 }
 0x1ae   :  { %v1014_v51 = vadd.f32 %v1013_v18, %v979_v28  ;;  %v1082_v18 = vsub.f32 %v1080_v7, %v1081_v53 }
 0x1b0   :  { %v1038_v17 = vand.u32 4294901760, %v1014_v51  ;;  %v1083_v35 = vand.u32 4294901760, %v1082_v18 }
 0x1b1   :  { %v941_v41 = vpop.f32.mrf.mxu3 }
 0x1b2   :  { %v1074_v45 = vsub.f32 %v1014_v51, %v1038_v17  ;;  %v942_v42 = vadd.f32 %v941_v41, %v900_v12  ;;  %1039 = vmatpush.msra.mxu2 %v1038_v17  ;;  %1202 = vmatpush.msra.mxu1 %v1038_v17  ;;  %v904_v22 = vpop.f32.mrf.mxu2 }
 0x1b3   :  { %v905_v51 = vadd.f32 %v904_v22, %v864_v50 }
 0x1b4   :  { %v983_v20 = vadd.f32 %v982_v58, %v942_v42  ;;  %1041 = vmatpush.msra.mxu2 %v1040_v31  ;;  %1204 = vmatpush.msra.mxu1 %v1040_v31  ;;  %v1075_v54 = vand.u32 4294901760, %v1074_v45  ;;  %v986_v58 = vpop.f32.mrf.mxu0 }
 0x1b5   :  { %1047 = vmatmul.f32.vlgmr.msra.gmra.mxu2 %v3830_v32  ;;  %1206 = vmatmul.f32.vlgmr.msra.gmra.mxu1 %v3814_v55 }
 0x1b6   :  { %v1018_v0 = vadd.f32 %v1017_v44, %v983_v20  ;;  %1110 = vmatpush.msrb.mxu2 %v1074_v45  ;;  %1173 = vmatpush.msra.mxu0 %v1075_v54  ;;  %v1076_v1 = vsub.f32 %v1074_v45, %v1075_v54  ;;  %v1406_v54 = vmul.f32 %v3789_v15, %v3789_v15 }
 0x1b8   :  { %1113 = vmatpush.msrb.mxu2 %v1080_v7  ;;  %1177 = vmatpush.msra.mxu0 %v1081_v53  ;;  %v1077_v28 = vand.u32 4294901760, %v1076_v1  ;;  %v1230_v30 = vand.u32 4294901760, %v1018_v0  ;;  %v1404_v7 = vmul.f32 %v3761_v2, %v3761_v2  ;;  %v1405_v2 = vmul.f32 %v3769_v6, %v3769_v6 }
 0x1b9   :  { %v947_v29 = vpop.f32.mrf.mxu3  ;;  %1179 = vmatmul.f32.vlgmr.msra.gmra.mxu0 %v3814_v55 }
 0x1ba   :  { %v948_v34 = vadd.f32 %v947_v29, %v905_v51  ;;  %1078 = vmatpush.msra.mxu3 %v1077_v28  ;;  %v1270_v39 = vsub.f32 %v1018_v0, %v1230_v30  ;;  %v1409_v46 = vsel %vm109_vm0, %v1404_v7, 0  ;;  %v1412_v42 = vsel %vm109_vm0, %v1405_v2, 0 }
 0x1bb   :  { %v3960_v41 = vand.u32 4294901760, %v1409_v46  ;;  %v1446_v20 = vand.u32 4294901760, %v1412_v42  ;;  %v1415_v0 = vsel %vm109_vm0, %v1406_v54, 0  ;;  %v1407_v51 = vmul.f32 %v3804_v27, %v3804_v27 }
 0x1bc   :  { %v987_v38 = vadd.f32 %v986_v58, %v948_v34  ;;  %1084 = vmatpush.msra.mxu3 %v1083_v35  ;;  %v1271_v48 = vand.u32 4294901760, %v1270_v39  ;;  %v1454_v15 = vand.u32 4294901760, %v1415_v0 }
 0x1bd   :  { %1055 = vmatmul.f32.gmra.mxu2 %v3839_v49  ;;  %1086 = vmatmul.f32.vlgmr.msra.gmra.mxu3 %v3814_v55  ;;  %v3970_v45 = vsub.f32 %v1409_v46, %v3960_v41  ;;  %v1447_v22 = vsub.f32 %v1412_v42, %v1446_v20  ;;  %v1418_v58 = vsel %vm109_vm0, %v1407_v51, 0 }
 0x1be   :  { %v1022_v40 = vadd.f32 %v1021_v37, %v987_v38  ;;  %1140 = vmatpush.msrb.mxu3 %v1038_v17  ;;  %1210 = vmatmul.f32.gmra.mxu1 %v3823_v11  ;;  %v1272_v17 = vsub.f32 %v1270_v39, %v1271_v48  ;;  %v1455_v29 = vsub.f32 %v1415_v0, %v1454_v15  ;;  %v1462_v35 = vand.u32 4294901760, %v1418_v58 }
 0x1bf   :  { %v1440_v53 = vand.u32 4294901760, %v3970_v45  ;;  %v1448_v18 = vand.u32 4294901760, %v1447_v22 }
 0x1c0   :  { %v1228_v43 = vand.u32 4294901760, %v1022_v40  ;;  %1142 = vmatpush.msrb.mxu3 %v1040_v31  ;;  %v1273_v6 = vand.u32 4294901760, %v1272_v17  ;;  %v1456_v34 = vand.u32 4294901760, %v1455_v29  ;;  %v1463_v37 = vsub.f32 %v1418_v58, %v1462_v35 }
 0x1c1   :  { %1183 = vmatmul.f32.gmra.mxu0 %v3823_v11  ;;  %v1441_v50 = vsub.f32 %v3970_v45, %v1440_v53  ;;  %v1449_v28 = vsub.f32 %v1447_v22, %v1448_v18 }
 0x1c2   :  { %v1264_v47 = vsub.f32 %v1022_v40, %v1228_v43  ;;  %1229 = vmatpush.msra.mxu2 %v1228_v43  ;;  %1330 = vmatpush.msrb.mxu1 %v1228_v43  ;;  %v1457_v27 = vsub.f32 %v1455_v29, %v1456_v34  ;;  %v1464_v7 = vand.u32 4294901760, %v1463_v37 }
 0x1c3   :  { %v1442_v1 = vand.u32 4294901760, %v1441_v50 }
 0x1c4   :  { %1231 = vmatpush.msra.mxu2 %v1230_v30  ;;  %1300 = vmatpush.msrb.mxu0 %v1264_v47  ;;  %v1265_v12 = vand.u32 4294901760, %v1264_v47  ;;  %v1458_v38 = vand.u32 4294901760, %v1457_v27 }
 0x1c5   :  { %1332 = vmatpush.msrb.mxu1 %v1230_v30  ;;  %1090 = vmatmul.f32.gmra.mxu3 %v3823_v11 }
 0x1c6   :  { %1116 = vmatmul.f32.vlgmr.msrb.gmra.mxu2 %v3817_v63  ;;  %1303 = vmatpush.msrb.mxu0 %v1270_v39  ;;  %v1266_v31 = vsub.f32 %v1264_v47, %v1265_v12  ;;  %v1465_v39 = vsub.f32 %v1463_v37, %v1464_v7 }
 0x1c7   :  { %1363 = vmatpush.msrb.mxu2 %v1265_v12  ;;  %1336 = vmatmul.f32.vlgmr.msrb.gmra.mxu1 %v3821_v8 }
 0x1c8   :  { %v1267_v44 = vand.u32 4294901760, %v1266_v31  ;;  %1435 = vmatpush.msra.mxu0 %v3763_v3  ;;  %1490 = vmatpush.msra.mxu1 %v3799_v23  ;;  %v1466_v40 = vand.u32 4294901760, %v1465_v39 }
 0x1c9   :  { %1367 = vmatpush.msrb.mxu2 %v1271_v48  ;;  %1306 = vmatmul.f32.vlgmr.msrb.gmra.mxu0 %v3817_v63 }
 0x1ca   :  { %1268 = vmatpush.msra.mxu3 %v1267_v44  ;;  %1437 = vmatpush.msra.mxu0 %v3765_v4 }
 0x1cb   :  { %1496 = vmatpush.msra.mxu1 %v3801_v24 }
 0x1cc   :  { %1615 = vmatpush.msrb.mxu0 %v3784_v13  ;;  %1274 = vmatpush.msra.mxu3 %v1273_v6 }
 0x1cd   :  { %1652 = vmatpush.msrb.mxu1 %v3763_v3  ;;  %1146 = vmatmul.f32.vlgmr.msrb.gmra.mxu3 %v3821_v8 }
 0x1ce   :  { %1619 = vmatpush.msrb.mxu0 %v3787_v14  ;;  %1121 = vmatmul.f32.gmra.mxu2 %v3828_v25 }
 0x1cf   :  { %1392 = vmatpush.msrb.mxu3 %v1228_v43  ;;  %1342 = vmatmul.f32.gmra.mxu1 %v3833_v33 }
 0x1d0   :  { %1654 = vmatpush.msrb.mxu1 %v3765_v4 }
 0x1d1   :  { %1394 = vmatpush.msrb.mxu3 %v1230_v30  ;;  %1311 = vmatmul.f32.gmra.mxu0 %v3828_v25  ;;  %v1450_v30 = vand.u32 4294901760, %v1449_v28 }
 0x1d5   :  { %1152 = vmatmul.f32.gmra.mxu3 %v3833_v33 }
 0x1d6   :  { %1237 = vmatmul.f32.vlgmr.msra.gmra.mxu2 %v3830_v32 }
 0x1d7   :  { %1498 = vmatmul.f32.vlgmr.msra.gmra.mxu1 %v3960_v41  ;;  %1530 = vmatpush.msra.mxu2 %v3774_v9 }
 0x1d9   :  { %1443 = vmatmul.f32.vlgmr.msra.gmra.mxu0 %v1442_v1  ;;  %1533 = vmatpush.msra.mxu2 %v3778_v10 }
 0x1dd   :  { %1276 = vmatmul.f32.vlgmr.msra.gmra.mxu3 %v3814_v55 }
 0x1de   :  { %1245 = vmatmul.f32.gmra.mxu2 %v3839_v49  ;;  %1570 = vmatpush.msra.mxu3 %v3763_v3 }
 0x1df   :  { %1502 = vmatmul.f32.gmra.mxu1 %v1446_v20 }
 0x1e0   :  { %1572 = vmatpush.msra.mxu3 %v3765_v4 }
 0x1e1   :  { %1451 = vmatmul.f32.gmra.mxu0 %v1450_v30 }
 0x1e5   :  { %1280 = vmatmul.f32.gmra.mxu3 %v3823_v11 }
 0x1e6   :  { %1369 = vmatmul.f32.vlgmr.msrb.gmra.mxu2 %v3814_v55 }
 0x1e7   :  { %1506 = vmatmul.f32.gmra.mxu1 %v1454_v15 }
 0x1e9   :  { %1459 = vmatmul.f32.gmra.mxu0 %v1458_v38 }
 0x1ed   :  { %1396 = vmatmul.f32.vlgmr.msrb.gmra.mxu3 %v3814_v55 }
 0x1ee   :  { %1373 = vmatmul.f32.gmra.mxu2 %v3823_v11 }
 0x1ef   :  { %1510 = vmatmul.f32.gmra.mxu1 %v1462_v35 }
 0x1f1   :  { %1467 = vmatmul.f32.gmra.mxu0 %v1466_v40 }
 0x1f5   :  { %1400 = vmatmul.f32.gmra.mxu3 %v3823_v11 }
 0x1f6   :  { %1536 = vmatmul.f32.vlgmr.msra.gmra.mxu2 %v3970_v45 }
 0x1f7   :  { %1656 = vmatmul.f32.vlgmr.msrb.gmra.mxu1 %v3960_v41 }
 0x1f9   :  { %1621 = vmatmul.f32.vlgmr.msrb.gmra.mxu0 %v3960_v41 }
 0x1fd   :  { %1576 = vmatmul.f32.vlgmr.msra.gmra.mxu3 %v1440_v53 }
 0x1fe   :  { %1541 = vmatmul.f32.gmra.mxu2 %v1447_v22 }
 0x1ff   :  { %1660 = vmatmul.f32.gmra.mxu1 %v1446_v20 }
 0x201   :  { %1625 = vmatmul.f32.gmra.mxu0 %v1446_v20 }
 0x205   :  { %1582 = vmatmul.f32.gmra.mxu3 %v1448_v18 }
 0x206   :  { %1546 = vmatmul.f32.gmra.mxu2 %v1455_v29 }
 0x207   :  { %1664 = vmatmul.f32.gmra.mxu1 %v1454_v15 }
 0x209   :  { %1629 = vmatmul.f32.gmra.mxu0 %v1454_v15 }
 0x20d   :  { %1588 = vmatmul.f32.gmra.mxu3 %v1456_v34 }
 0x20e   :  { %1551 = vmatmul.f32.gmra.mxu2 %v1463_v37 }
 0x20f   :  { %1668 = vmatmul.f32.gmra.mxu1 %v1462_v35 }
 0x211   :  { %1633 = vmatmul.f32.gmra.mxu0 %v1462_v35 }
 0x215   :  { %1594 = vmatmul.f32.gmra.mxu3 %v1464_v7 }
 0x232   :  { %v4009_v43 = vpop.f32.mrf.mxu1 }
 0x233   :  { %4520 = vst [vmem:[#allocation36_spill] sm:$0xff] %v4009_v43 }
 0x236   :  { %v4011_v46 = vpop.f32.mrf.mxu0 }
 0x237   :  { %4521 = vst [vmem:[#allocation37_spill] sm:$0xff] %v4011_v46 }
 0x238   :  { %v4013_v47 = vpop.f32.mrf.mxu2 }
 0x23b   :  { %v4015_v48 = vpop.f32.mrf.mxu1 }
 0x23c   :  { %4522 = vst [vmem:[#allocation38_spill] sm:$0xff] %v4015_v48 }
 0x23e   :  { %v4017_v12 = vpop.f32.mrf.mxu0 }
 0x23f   :  { %4523 = vst [vmem:[#allocation39_spill] sm:$0xff] %v4017_v12 }
 0x240   :  { %v4019_v41 = vpop.f32.mrf.mxu2  ;;  %v4021_v2 = vpop.f32.mrf.mxu3 }
 0x241   :  { %4524 = vst [vmem:[#allocation40_spill] sm:$0xff] %v4019_v41 }
 0x244   :  { %v4023_v31 = vpop.f32.mrf.mxu1 }
 0x245   :  { %4525 = vst [vmem:[#allocation41_spill] sm:$0xff] %v4023_v31 }
 0x246   :  { %v4025_v17 = vpop.f32.mrf.mxu0 }
 0x248   :  { %v4027_v44 = vpop.f32.mrf.mxu3 }
 0x249   :  { %4526 = vst [vmem:[#allocation42_spill] sm:$0xff] %v4027_v44  ;;  %v4029_v45 = vpop.f32.mrf.mxu2 }
 0x24c   :  { %v4031_v6 = vpop.f32.mrf.mxu1 }
 0x24d   :  { %4527 = vst [vmem:[#allocation43_spill] sm:$0xff] %v4031_v6 }
 0x24e   :  { %v4033_v42 = vpop.f32.mrf.mxu0 }
 0x24f   :  { %4528 = vst [vmem:[#allocation44_spill] sm:$0xff] %v4033_v42 }
 0x250   :  { %v4035_v53 = vpop.f32.mrf.mxu3 }
 0x251   :  { %v4037_v20 = vpop.f32.mrf.mxu2 }
 0x252   :  { %4529 = vst [vmem:[#allocation45_spill] sm:$0xff] %v4037_v20 }
 0x254   :  { %v1499_v50 = vpop.f32.mrf.mxu1 }
 0x256   :  { %v1444_v54 = vpop.f32.mrf.mxu0 }
 0x257   :  { %v1500_v48 = vadd.f32 %v1499_v50, %v1444_v54 }
 0x258   :  { %v4039_v22 = vpop.f32.mrf.mxu3 }
 0x259   :  { %4530 = vst [vmem:[#allocation46_spill] sm:$0xff] %v4039_v22  ;;  %v4041_v0 = vpop.f32.mrf.mxu2 }
 0x25c   :  { %v1503_v15 = vpop.f32.mrf.mxu1 }
 0x25e   :  { %v1452_v1 = vpop.f32.mrf.mxu0 }
 0x260   :  { %v4043_v18 = vpop.f32.mrf.mxu3 }
 0x261   :  { %v4045_v51 = vpop.f32.mrf.mxu2 }
 0x262   :  { %4531 = vst [vmem:[#allocation47_spill] sm:$0xff] %v4045_v51 }
 0x264   :  { %v1507_v30 = vpop.f32.mrf.mxu1 }
 0x266   :  { %v1460_v28 = vpop.f32.mrf.mxu0 }
 0x268   :  { %v4047_v29 = vpop.f32.mrf.mxu3 }
 0x269   :  { %4532 = vst [vmem:[#allocation48_spill] sm:$0xff] %v4047_v29  ;;  %v4049_v58 = vpop.f32.mrf.mxu2 }
 0x26a   :  { %4533 = vst [vmem:[#allocation49_spill] sm:$0xff] %v4049_v58  ;;  %v1504_v58 = vadd.f32 %v1503_v15, %v1452_v1 }
 0x26c   :  { %v1511_v37 = vpop.f32.mrf.mxu1 }
 0x26e   :  { %v1468_v35 = vpop.f32.mrf.mxu0 }
 0x26f   :  { %v1512_v1 = vadd.f32 %v1511_v37, %v1468_v35 }
 0x270   :  { %v4051_v34 = vpop.f32.mrf.mxu3 }
 0x271   :  { %4534 = vst [vmem:[#allocation50_spill] sm:$0xff] %v4051_v34  ;;  %v4053_v27 = vpop.f32.mrf.mxu2 }
 0x272   :  { %4535 = vst [vmem:[#allocation51_spill] sm:$0xff] %v4053_v27 }
 0x274   :  { %v1657_v40 = vpop.f32.mrf.mxu1 }
 0x276   :  { %v1622_v39 = vpop.f32.mrf.mxu0 }
 0x278   :  { %v4055_v38 = vpop.f32.mrf.mxu3 }
 0x279   :  { %4536 = vst [vmem:[#allocation52_spill] sm:$0xff] %v4055_v38  ;;  %v1537_v7 = vpop.f32.mrf.mxu2  ;;  %v1508_v38 = vadd.f32 %v1507_v30, %v1460_v28 }
 0x27a   :  { %v1538_v6 = vadd.f32 %v1537_v7, %v1500_v48 }
 0x27c   :  { %v1661_v29 = vpop.f32.mrf.mxu1 }
 0x27e   :  { %v1626_v20 = vpop.f32.mrf.mxu0 }
 0x280   :  { %v1577_v12 = vpop.f32.mrf.mxu3 }
 0x281   :  { %v1542_v42 = vpop.f32.mrf.mxu2  ;;  %v1578_v22 = vadd.f32 %v1577_v12, %v1538_v6 }
 0x282   :  { %v1543_v34 = vadd.f32 %v1542_v42, %v1504_v58 }
 0x283   :  { %v1623_v43 = vadd.f32 %v1622_v39, %v1578_v22 }
 0x284   :  { %v1665_v7 = vpop.f32.mrf.mxu1 }
 0x285   :  { %v1658_v31 = vadd.f32 %v1657_v40, %v1623_v43 }
 0x286   :  { %v1630_v5 = vpop.f32.mrf.mxu0 }
 0x287   :  { %v1688_v46 = vand.u32 4294901760, %v1658_v31 }
 0x288   :  { %v1583_v51 = vpop.f32.mrf.mxu3 }
 0x289   :  { %v1584_v27 = vadd.f32 %v1583_v51, %v1543_v34  ;;  %v1547_v44 = vpop.f32.mrf.mxu2  ;;  %v1728_v61 = vsub.f32 %v1658_v31, %v1688_v46 }
 0x28a   :  { %v1548_v54 = vadd.f32 %v1547_v44, %v1508_v38 }
 0x28b   :  { %v1627_v41 = vadd.f32 %v1626_v20, %v1584_v27  ;;  %v1729_v43 = vand.u32 4294901760, %v1728_v61 }
 0x28c   :  { %v1669_v30 = vpop.f32.mrf.mxu1 }
 0x28d   :  { %v1662_v56 = vadd.f32 %v1661_v29, %v1627_v41  ;;  %v1730_v44 = vsub.f32 %v1728_v61, %v1729_v43 }
 0x28f   :  { %v1686_v48 = vand.u32 4294901760, %v1662_v56  ;;  %v1731_v58 = vand.u32 4294901760, %v1730_v44 }
 0x290   :  { %v1589_v50 = vpop.f32.mrf.mxu3 }
 0x291   :  { %v1722_v12 = vsub.f32 %v1662_v56, %v1686_v48  ;;  %v1590_v6 = vadd.f32 %v1589_v50, %v1548_v54  ;;  %1687 = vmatpush.msrb.mxu2 %v1686_v48  ;;  %1850 = vmatpush.msra.mxu1 %v1686_v48  ;;  %v1552_v15 = vpop.f32.mrf.mxu2 }
 0x292   :  { %v1553_v56 = vadd.f32 %v1552_v15, %v1512_v1 }
 0x293   :  { %v1631_v22 = vadd.f32 %v1630_v5, %v1590_v6  ;;  %1689 = vmatpush.msrb.mxu2 %v1688_v46  ;;  %1852 = vmatpush.msra.mxu1 %v1688_v46  ;;  %v1723_v42 = vand.u32 4294901760, %v1722_v12  ;;  %v1634_v5 = vpop.f32.mrf.mxu0 }
 0x294   :  { %1695 = vmatmul.f32.vlgmr.msrb.gmra.mxu2 %v3830_v32  ;;  %1854 = vmatmul.f32.vlgmr.msra.gmra.mxu1 %v3814_v55 }
 0x295   :  { %v1666_v41 = vadd.f32 %v1665_v7, %v1631_v22  ;;  %1758 = vmatpush.msra.mxu2 %v1722_v12  ;;  %1821 = vmatpush.msra.mxu0 %v1723_v42  ;;  %v1724_v31 = vsub.f32 %v1722_v12, %v1723_v42  ;;  %v2054_v42 = vmul.f32 %v3873_v26, %v3873_v26 }
 0x296   :  { %v2055_v26 = vmul.f32 %v3883_v36, %v3883_v36 }
 0x297   :  { %1761 = vmatpush.msra.mxu2 %v1728_v61  ;;  %1825 = vmatpush.msra.mxu0 %v1729_v43  ;;  %v1725_v20 = vand.u32 4294901760, %v1724_v31  ;;  %v1878_v28 = vand.u32 4294901760, %v1666_v41  ;;  %v2052_v61 = vmul.f32 %v3845_v59, %v3845_v59 }
 0x298   :  { %v1595_v51 = vpop.f32.mrf.mxu3  ;;  %1827 = vmatmul.f32.vlgmr.msra.gmra.mxu0 %v3814_v55 }
 0x299   :  { %v1596_v29 = vadd.f32 %v1595_v51, %v1553_v56  ;;  %1726 = vmatpush.msrb.mxu3 %v1725_v20  ;;  %v1918_v35 = vsub.f32 %v1666_v41, %v1878_v28  ;;  %v2057_v38 = vsel %vm109_vm0, %v2052_v61, 0  ;;  %v2063_v41 = vsel %vm109_vm0, %v2054_v42, 0 }
 0x29a   :  { %v4067_v50 = vand.u32 4294901760, %v2057_v38  ;;  %v2102_v56 = vand.u32 4294901760, %v2063_v41 }
 0x29b   :  { %v1635_v34 = vadd.f32 %v1634_v5, %v1596_v29  ;;  %1732 = vmatpush.msrb.mxu3 %v1731_v58  ;;  %v1919_v40 = vand.u32 4294901760, %v1918_v35  ;;  %v2066_v5 = vsel %vm109_vm0, %v2055_v26, 0 }
 0x29c   :  { %1703 = vmatmul.f32.gmra.mxu2 %v3839_v49  ;;  %1734 = vmatmul.f32.vlgmr.msrb.gmra.mxu3 %v3814_v55  ;;  %v4078_v12 = vsub.f32 %v2057_v38, %v4067_v50  ;;  %v2103_v51 = vsub.f32 %v2063_v41, %v2102_v56  ;;  %v2110_v58 = vand.u32 4294901760, %v2066_v5 }
 0x29d   :  { %v1670_v27 = vadd.f32 %v1669_v30, %v1635_v34  ;;  %1788 = vmatpush.msra.mxu3 %v1686_v48  ;;  %1858 = vmatmul.f32.gmra.mxu1 %v3823_v11  ;;  %v2053_v48 = vmul.f32 %v3854_v16, %v3854_v16 }
 0x29e   :  { %v2088_v43 = vand.u32 4294901760, %v4078_v12  ;;  %v2104_v29 = vand.u32 4294901760, %v2103_v51  ;;  %v2111_v30 = vsub.f32 %v2066_v5, %v2110_v58 }
 0x29f   :  { %v1876_v37 = vand.u32 4294901760, %v1670_v27  ;;  %1790 = vmatpush.msra.mxu3 %v1688_v46  ;;  %v1920_v46 = vsub.f32 %v1918_v35, %v1919_v40  ;;  %v2060_v16 = vsel %vm109_vm0, %v2053_v48, 0 }
 0x2a0   :  { %1831 = vmatmul.f32.gmra.mxu0 %v3823_v11  ;;  %v2094_v22 = vand.u32 4294901760, %v2060_v16  ;;  %v2089_v1 = vsub.f32 %v4078_v12, %v2088_v43  ;;  %v2105_v36 = vsub.f32 %v2103_v51, %v2104_v29  ;;  %v2112_v61 = vand.u32 4294901760, %v2111_v30 }
 0x2a1   :  { %v1912_v39 = vsub.f32 %v1670_v27, %v1876_v37  ;;  %1877 = vmatpush.msrb.mxu2 %v1876_v37  ;;  %1978 = vmatpush.msrb.mxu1 %v1876_v37  ;;  %v1921_v6 = vand.u32 4294901760, %v1920_v46 }
 0x2a2   :  { %v2095_v15 = vsub.f32 %v2060_v16, %v2094_v22  ;;  %v2090_v31 = vand.u32 4294901760, %v2089_v1  ;;  %v2106_v34 = vand.u32 4294901760, %v2105_v36 }
 0x2a3   :  { %1879 = vmatpush.msrb.mxu2 %v1878_v28  ;;  %1948 = vmatpush.msrb.mxu0 %v1912_v39  ;;  %v1913_v54 = vand.u32 4294901760, %v1912_v39 }
 0x2a4   :  { %1980 = vmatpush.msrb.mxu1 %v1878_v28  ;;  %1738 = vmatmul.f32.gmra.mxu3 %v3823_v11  ;;  %v2096_v44 = vand.u32 4294901760, %v2095_v15 }
 0x2a5   :  { %1764 = vmatmul.f32.vlgmr.msra.gmra.mxu2 %v3817_v63  ;;  %1951 = vmatpush.msrb.mxu0 %v1918_v35  ;;  %v1914_v59 = vsub.f32 %v1912_v39, %v1913_v54  ;;  %v2113_v35 = vsub.f32 %v2111_v30, %v2112_v61 }
 0x2a6   :  { %2011 = vmatpush.msra.mxu2 %v1913_v54  ;;  %1984 = vmatmul.f32.vlgmr.msrb.gmra.mxu1 %v3821_v8  ;;  %v2097_v20 = vsub.f32 %v2095_v15, %v2096_v44 }
 0x2a7   :  { %v1915_v7 = vand.u32 4294901760, %v1914_v59  ;;  %2083 = vmatpush.msra.mxu0 %v3763_v3  ;;  %2138 = vmatpush.msra.mxu1 %v3799_v23  ;;  %v2114_v27 = vand.u32 4294901760, %v2113_v35 }
 0x2a8   :  { %2015 = vmatpush.msra.mxu2 %v1919_v40  ;;  %1954 = vmatmul.f32.vlgmr.msrb.gmra.mxu0 %v3817_v63 }
 0x2a9   :  { %1916 = vmatpush.msrb.mxu3 %v1915_v7  ;;  %2085 = vmatpush.msra.mxu0 %v3765_v4 }
 0x2aa   :  { %2144 = vmatpush.msra.mxu1 %v3801_v24 }
 0x2ab   :  { %2263 = vmatpush.msrb.mxu0 %v3784_v13  ;;  %1922 = vmatpush.msrb.mxu3 %v1921_v6 }
 0x2ac   :  { %2300 = vmatpush.msrb.mxu1 %v3763_v3  ;;  %1794 = vmatmul.f32.vlgmr.msra.gmra.mxu3 %v3821_v8 }
 0x2ad   :  { %2267 = vmatpush.msrb.mxu0 %v3787_v14  ;;  %1769 = vmatmul.f32.gmra.mxu2 %v3828_v25 }
 0x2ae   :  { %2040 = vmatpush.msra.mxu3 %v1876_v37  ;;  %1990 = vmatmul.f32.gmra.mxu1 %v3833_v33 }
 0x2af   :  { %2302 = vmatpush.msrb.mxu1 %v3765_v4 }
 0x2b0   :  { %2042 = vmatpush.msra.mxu3 %v1878_v28  ;;  %1959 = vmatmul.f32.gmra.mxu0 %v3828_v25  ;;  %v2098_v28 = vand.u32 4294901760, %v2097_v20 }
 0x2b4   :  { %1800 = vmatmul.f32.gmra.mxu3 %v3833_v33 }
 0x2b5   :  { %1885 = vmatmul.f32.vlgmr.msrb.gmra.mxu2 %v3830_v32 }
 0x2b6   :  { %2146 = vmatmul.f32.vlgmr.msra.gmra.mxu1 %v4067_v50  ;;  %2178 = vmatpush.msrb.mxu2 %v3774_v9 }
 0x2b8   :  { %2091 = vmatmul.f32.vlgmr.msra.gmra.mxu0 %v2090_v31  ;;  %2181 = vmatpush.msrb.mxu2 %v3778_v10 }
 0x2bc   :  { %1924 = vmatmul.f32.vlgmr.msrb.gmra.mxu3 %v3814_v55 }
 0x2bd   :  { %1893 = vmatmul.f32.gmra.mxu2 %v3839_v49  ;;  %2218 = vmatpush.msrb.mxu3 %v3763_v3 }
 0x2be   :  { %2150 = vmatmul.f32.gmra.mxu1 %v2094_v22 }
 0x2bf   :  { %2220 = vmatpush.msrb.mxu3 %v3765_v4 }
 0x2c0   :  { %2099 = vmatmul.f32.gmra.mxu0 %v2098_v28 }
 0x2c4   :  { %1928 = vmatmul.f32.gmra.mxu3 %v3823_v11 }
 0x2c5   :  { %2017 = vmatmul.f32.vlgmr.msra.gmra.mxu2 %v3814_v55 }
 0x2c6   :  { %2154 = vmatmul.f32.gmra.mxu1 %v2102_v56 }
 0x2c8   :  { %2107 = vmatmul.f32.gmra.mxu0 %v2106_v34 }
 0x2cc   :  { %2044 = vmatmul.f32.vlgmr.msra.gmra.mxu3 %v3814_v55 }
 0x2cd   :  { %2021 = vmatmul.f32.gmra.mxu2 %v3823_v11 }
 0x2ce   :  { %2158 = vmatmul.f32.gmra.mxu1 %v2110_v58 }
 0x2d0   :  { %2115 = vmatmul.f32.gmra.mxu0 %v2114_v27 }
 0x2d4   :  { %2048 = vmatmul.f32.gmra.mxu3 %v3823_v11 }
 0x2d5   :  { %2184 = vmatmul.f32.vlgmr.msrb.gmra.mxu2 %v4078_v12 }
 0x2d6   :  { %2304 = vmatmul.f32.vlgmr.msrb.gmra.mxu1 %v4067_v50 }
 0x2d8   :  { %2269 = vmatmul.f32.vlgmr.msrb.gmra.mxu0 %v4067_v50 }
 0x2dc   :  { %2224 = vmatmul.f32.vlgmr.msrb.gmra.mxu3 %v2088_v43 }
 0x2dd   :  { %2189 = vmatmul.f32.gmra.mxu2 %v2095_v15 }
 0x2de   :  { %2308 = vmatmul.f32.gmra.mxu1 %v2094_v22 }
 0x2e0   :  { %2273 = vmatmul.f32.gmra.mxu0 %v2094_v22 }
 0x2e4   :  { %2230 = vmatmul.f32.gmra.mxu3 %v2096_v44 }
 0x2e5   :  { %2194 = vmatmul.f32.gmra.mxu2 %v2103_v51 }
 0x2e6   :  { %2312 = vmatmul.f32.gmra.mxu1 %v2102_v56 }
 0x2e8   :  { %2277 = vmatmul.f32.gmra.mxu0 %v2102_v56 }
 0x2ec   :  { %2236 = vmatmul.f32.gmra.mxu3 %v2104_v29 }
 0x2ed   :  { %2199 = vmatmul.f32.gmra.mxu2 %v2111_v30 }
 0x2ee   :  { %2316 = vmatmul.f32.gmra.mxu1 %v2110_v58 }
 0x2f0   :  { %2281 = vmatmul.f32.gmra.mxu0 %v2110_v58 }
 0x2f4   :  { %2242 = vmatmul.f32.gmra.mxu3 %v2112_v61 }
 0x311   :  { %v4116_v37 = vpop.f32.mrf.mxu1 }
 0x312   :  { %4537 = vst [vmem:[#allocation53_spill] sm:$0xff] %v4116_v37 }
 0x315   :  { %v4118_v38 = vpop.f32.mrf.mxu0 }
 0x316   :  { %4538 = vst [vmem:[#allocation54_spill] sm:$0xff] %v4118_v38 }
 0x317   :  { %v4120_v39 = vpop.f32.mrf.mxu2 }
 0x31a   :  { %v4122_v40 = vpop.f32.mrf.mxu1 }
 0x31b   :  { %4539 = vst [vmem:[#allocation55_spill] sm:$0xff] %v4122_v40 }
 0x31d   :  { %v4124_v54 = vpop.f32.mrf.mxu0 }
 0x31e   :  { %4540 = vst [vmem:[#allocation56_spill] sm:$0xff] %v4124_v54 }
 0x31f   :  { %v4126_v50 = vpop.f32.mrf.mxu2  ;;  %v4128_v59 = vpop.f32.mrf.mxu3 }
 0x320   :  { %4541 = vst [vmem:[#allocation57_spill] sm:$0xff] %v4126_v50 }
 0x323   :  { %v4130_v46 = vpop.f32.mrf.mxu1 }
 0x324   :  { %4542 = vst [vmem:[#allocation58_spill] sm:$0xff] %v4130_v46 }
 0x325   :  { %v4132_v48 = vpop.f32.mrf.mxu0 }
 0x326   :  { %4543 = vst [vmem:[#allocation59_spill] sm:$0xff] %v4132_v48 }
 0x327   :  { %v4134_v7 = vpop.f32.mrf.mxu3 }
 0x328   :  { %4544 = vst [vmem:[#allocation60_spill] sm:$0xff] %v4134_v7  ;;  %v4136_v12 = vpop.f32.mrf.mxu2 }
 0x329   :  { %4545 = vst [vmem:[#allocation61_spill] sm:$0xff] %v4136_v12 }
 0x32b   :  { %v4138_v6 = vpop.f32.mrf.mxu1 }
 0x32c   :  { %4546 = vst [vmem:[#allocation62_spill] sm:$0xff] %v4138_v6 }
 0x32d   :  { %v4140_v16 = vpop.f32.mrf.mxu0 }
 0x32e   :  { %4547 = vst [vmem:[#allocation63_spill] sm:$0xff] %v4140_v16 }
 0x32f   :  { %v4142_v43 = vpop.f32.mrf.mxu3 }
 0x330   :  { %4548 = vst [vmem:[#allocation64_spill] sm:$0xff] %v4142_v43  ;;  %v4144_v22 = vpop.f32.mrf.mxu2 }
 0x331   :  { %4549 = vst [vmem:[#allocation65_spill] sm:$0xff] %v4144_v22 }
 0x333   :  { %v2147_v1 = vpop.f32.mrf.mxu1 }
 0x335   :  { %v2092_v42 = vpop.f32.mrf.mxu0 }
 0x336   :  { %v2148_v40 = vadd.f32 %v2147_v1, %v2092_v42 }
 0x337   :  { %v4146_v15 = vpop.f32.mrf.mxu3 }
 0x338   :  { %4550 = vst [vmem:[#allocation66_spill] sm:$0xff] %v4146_v15  ;;  %v4148_v41 = vpop.f32.mrf.mxu2 }
 0x33b   :  { %v2151_v56 = vpop.f32.mrf.mxu1 }
 0x33d   :  { %v2100_v31 = vpop.f32.mrf.mxu0 }
 0x33f   :  { %v4150_v44 = vpop.f32.mrf.mxu3 }
 0x340   :  { %v4152_v26 = vpop.f32.mrf.mxu2 }
 0x341   :  { %4551 = vst [vmem:[#allocation67_spill] sm:$0xff] %v4152_v26 }
 0x343   :  { %v2155_v28 = vpop.f32.mrf.mxu1 }
 0x345   :  { %v2108_v20 = vpop.f32.mrf.mxu0 }
 0x347   :  { %v4154_v51 = vpop.f32.mrf.mxu3 }
 0x348   :  { %4552 = vst [vmem:[#allocation68_spill] sm:$0xff] %v4154_v51  ;;  %v4156_v5 = vpop.f32.mrf.mxu2 }
 0x349   :  { %4553 = vst [vmem:[#allocation69_spill] sm:$0xff] %v4156_v5  ;;  %v2152_v5 = vadd.f32 %v2151_v56, %v2100_v31 }
 0x34b   :  { %v2159_v30 = vpop.f32.mrf.mxu1 }
 0x34d   :  { %v2116_v58 = vpop.f32.mrf.mxu0 }
 0x34e   :  { %v2160_v31 = vadd.f32 %v2159_v30, %v2116_v58  ;;  %v3558_v58 = vld [vmem:[#allocation9] sm:$0xff] }
 0x34f   :  { %v4158_v29 = vpop.f32.mrf.mxu3 }
 0x350   :  { %4554 = vst [vmem:[#allocation70_spill] sm:$0xff] %v4158_v29  ;;  %v4160_v36 = vpop.f32.mrf.mxu2 }
 0x351   :  { %4555 = vst [vmem:[#allocation71_spill] sm:$0xff] %v4160_v36 }
 0x353   :  { %v2305_v27 = vpop.f32.mrf.mxu1 }
 0x355   :  { %v2270_v35 = vpop.f32.mrf.mxu0 }
 0x357   :  { %v4162_v34 = vpop.f32.mrf.mxu3 }
 0x358   :  { %4556 = vst [vmem:[#allocation72_spill] sm:$0xff] %v4162_v34  ;;  %v2185_v61 = vpop.f32.mrf.mxu2  ;;  %v2156_v34 = vadd.f32 %v2155_v28, %v2108_v20 }
 0x359   :  { %v2186_v6 = vadd.f32 %v2185_v61, %v2148_v40 }
 0x35b   :  { %v2309_v51 = vpop.f32.mrf.mxu1 }
 0x35d   :  { %v2274_v22 = vpop.f32.mrf.mxu0 }
 0x35f   :  { %v2225_v54 = vpop.f32.mrf.mxu3 }
 0x360   :  { %v2190_v16 = vpop.f32.mrf.mxu2  ;;  %v2226_v15 = vadd.f32 %v2225_v54, %v2186_v6 }
 0x361   :  { %v2191_v29 = vadd.f32 %v2190_v16, %v2152_v5 }
 0x362   :  { %v2271_v37 = vadd.f32 %v2270_v35, %v2226_v15 }
 0x363   :  { %v2313_v61 = vpop.f32.mrf.mxu1 }
 0x364   :  { %v2306_v46 = vadd.f32 %v2305_v27, %v2271_v37 }
 0x365   :  { %v2278_v12 = vpop.f32.mrf.mxu0 }
 0x366   :  { %v2336_v38 = vand.u32 4294901760, %v2306_v46 }
 0x367   :  { %v2231_v26 = vpop.f32.mrf.mxu3 }
 0x368   :  { %v2232_v36 = vadd.f32 %v2231_v26, %v2191_v29  ;;  %v2195_v7 = vpop.f32.mrf.mxu2  ;;  %v2376_v48 = vsub.f32 %v2306_v46, %v2336_v38 }
 0x369   :  { %v2196_v42 = vadd.f32 %v2195_v7, %v2156_v34 }
 0x36a   :  { %v2275_v50 = vadd.f32 %v2274_v22, %v2232_v36  ;;  %v2377_v37 = vand.u32 4294901760, %v2376_v48  ;;  %v3559_v36 = vld [vmem:[#allocation10] sm:$0xff] }
 0x36b   :  { %v2317_v28 = vpop.f32.mrf.mxu1 }
 0x36c   :  { %v2310_v43 = vadd.f32 %v2309_v51, %v2275_v50  ;;  %v2378_v7 = vsub.f32 %v2376_v48, %v2377_v37 }
 0x36d   :  { %v2282_v20 = vpop.f32.mrf.mxu0 }
 0x36e   :  { %v2334_v40 = vand.u32 4294901760, %v2310_v43  ;;  %v2379_v5 = vand.u32 4294901760, %v2378_v7  ;;  %v3562_v7 = vld [vmem:[#allocation9 + $0x10] sm:$0xff] }
 0x36f   :  { %v2237_v1 = vpop.f32.mrf.mxu3 }
 0x370   :  { %v2370_v54 = vsub.f32 %v2310_v43, %v2334_v40  ;;  %v2238_v6 = vadd.f32 %v2237_v1, %v2196_v42  ;;  %2335 = vmatpush.msra.mxu2 %v2334_v40  ;;  %2498 = vmatpush.msra.mxu1 %v2334_v40  ;;  %v2200_v56 = vpop.f32.mrf.mxu2 }
 0x371   :  { %v2201_v43 = vadd.f32 %v2200_v56, %v2160_v31 }
 0x372   :  { %v2371_v15 = vand.u32 4294901760, %v2370_v54  ;;  %v2279_v16 = vadd.f32 %v2278_v12, %v2238_v6  ;;  %2337 = vmatpush.msra.mxu2 %v2336_v38  ;;  %2500 = vmatpush.msra.mxu1 %v2336_v38  ;;  %v3561_v6 = vld [vmem:[#allocation10 + $0x8] sm:$0xff] }
 0x373   :  { %2343 = vmatmul.f32.vlgmr.msra.gmra.mxu2 %v3830_v32  ;;  %2502 = vmatmul.f32.vlgmr.msra.gmra.mxu1 %v3814_v55 }
 0x374   :  { %v2372_v50 = vsub.f32 %v2370_v54, %v2371_v15  ;;  %v2314_v46 = vadd.f32 %v2313_v61, %v2279_v16  ;;  %2406 = vmatpush.msrb.mxu2 %v2370_v54  ;;  %2469 = vmatpush.msra.mxu0 %v2371_v15 }
 0x376   :  { %2409 = vmatpush.msrb.mxu2 %v2376_v48  ;;  %2473 = vmatpush.msra.mxu0 %v2377_v37  ;;  %v2373_v22 = vand.u32 4294901760, %v2372_v50  ;;  %v2526_v12 = vand.u32 4294901760, %v2314_v46  ;;  %v2700_v48 = vmul.f32 %v3559_v36, %v3558_v58 }
 0x377   :  { %v2243_v26 = vpop.f32.mrf.mxu3  ;;  %2475 = vmatmul.f32.vlgmr.msra.gmra.mxu0 %v3814_v55 }
 0x378   :  { %v2244_v51 = vadd.f32 %v2243_v26, %v2201_v43  ;;  %2374 = vmatpush.msra.mxu3 %v2373_v22  ;;  %v2566_v30 = vsub.f32 %v2314_v46, %v2526_v12  ;;  %v2705_v27 = vsel %vm109_vm0, %v2700_v48, 0  ;;  %v3563_v43 = vld [vmem:[#allocation10 + $0x10] sm:$0xff] }
 0x379   :  { %v4172_v54 = vand.u32 4294901760, %v2705_v27  ;;  %v2702_v22 = vmul.f32 %v3563_v43, %v3562_v7 }
 0x37a   :  { %v2283_v29 = vadd.f32 %v2282_v20, %v2244_v51  ;;  %2380 = vmatpush.msra.mxu3 %v2379_v5  ;;  %v2567_v1 = vand.u32 4294901760, %v2566_v30  ;;  %v3564_v5 = vld [vmem:[#allocation9 + $0x18] sm:$0xff] }
 0x37b   :  { %2351 = vmatmul.f32.gmra.mxu2 %v3839_v49  ;;  %2382 = vmatmul.f32.vlgmr.msra.gmra.mxu3 %v3814_v55  ;;  %v4180_v31 = vsub.f32 %v2705_v27, %v4172_v54  ;;  %v2711_v26 = vsel %vm109_vm0, %v2702_v22, 0 }
 0x37c   :  { %v2318_v34 = vadd.f32 %v2317_v28, %v2283_v29  ;;  %2436 = vmatpush.msrb.mxu3 %v2334_v40  ;;  %2506 = vmatmul.f32.gmra.mxu1 %v3823_v11  ;;  %v3560_v40 = vld [vmem:[#allocation9 + $0x8] sm:$0xff]  ;;  %v2568_v15 = vsub.f32 %v2566_v30, %v2567_v1  ;;  %v2750_v51 = vand.u32 4294901760, %v2711_v26  ;;  %v3565_v28 = vld [vmem:[#allocation10 + $0x18] sm:$0xff] }
 0x37d   :  { %v2701_v37 = vmul.f32 %v3561_v6, %v3560_v40  ;;  %v2703_v29 = vmul.f32 %v3565_v28, %v3564_v5 }
 0x37e   :  { %v2524_v35 = vand.u32 4294901760, %v2318_v34  ;;  %2438 = vmatpush.msrb.mxu3 %v2336_v38  ;;  %v2569_v56 = vand.u32 4294901760, %v2568_v15  ;;  %v2751_v58 = vsub.f32 %v2711_v26, %v2750_v51 }
 0x37f   :  { %2479 = vmatmul.f32.gmra.mxu0 %v3823_v11  ;;  %v2708_v50 = vsel %vm109_vm0, %v2701_v37, 0  ;;  %v2714_v36 = vsel %vm109_vm0, %v2703_v29, 0 }
 0x380   :  { %v2560_v42 = vsub.f32 %v2318_v34, %v2524_v35  ;;  %2525 = vmatpush.msra.mxu2 %v2524_v35  ;;  %2626 = vmatpush.msrb.mxu1 %v2524_v35  ;;  %v2742_v46 = vand.u32 4294901760, %v2708_v50  ;;  %v2758_v34 = vand.u32 4294901760, %v2714_v36 }
 0x382   :  { %v2561_v61 = vand.u32 4294901760, %v2560_v42  ;;  %2527 = vmatpush.msra.mxu2 %v2526_v12  ;;  %2596 = vmatpush.msrb.mxu0 %v2560_v42 }
 0x383   :  { %2628 = vmatpush.msrb.mxu1 %v2526_v12  ;;  %2386 = vmatmul.f32.gmra.mxu3 %v3823_v11 }
 0x384   :  { %v2562_v38 = vsub.f32 %v2560_v42, %v2561_v61  ;;  %2412 = vmatmul.f32.vlgmr.msrb.gmra.mxu2 %v3817_v63  ;;  %2599 = vmatpush.msrb.mxu0 %v2566_v30  ;;  %v2752_v30 = vand.u32 4294901760, %v2751_v58 }
 0x385   :  { %2659 = vmatpush.msrb.mxu2 %v2561_v61  ;;  %2632 = vmatmul.f32.vlgmr.msrb.gmra.mxu1 %v3821_v8 }
 0x386   :  { %v2563_v16 = vand.u32 4294901760, %v2562_v38  ;;  %2731 = vmatpush.msra.mxu0 %v3763_v3  ;;  %2786 = vmatpush.msra.mxu1 %v3799_v23  ;;  %v2736_v23 = vand.u32 4294901760, %v4180_v31 }
 0x387   :  { %2663 = vmatpush.msrb.mxu2 %v2567_v1  ;;  %2602 = vmatmul.f32.vlgmr.msrb.gmra.mxu0 %v3817_v63 }
 0x388   :  { %2564 = vmatpush.msra.mxu3 %v2563_v16  ;;  %2733 = vmatpush.msra.mxu0 %v3765_v4 }
 0x389   :  { %2792 = vmatpush.msra.mxu1 %v3801_v24  ;;  %v2743_v24 = vsub.f32 %v2708_v50, %v2742_v46 }
 0x38a   :  { %2911 = vmatpush.msrb.mxu0 %v3784_v13  ;;  %2570 = vmatpush.msra.mxu3 %v2569_v56  ;;  %v2737_v13 = vsub.f32 %v4180_v31, %v2736_v23 }
 0x38b   :  { %2948 = vmatpush.msrb.mxu1 %v3763_v3  ;;  %2442 = vmatmul.f32.vlgmr.msrb.gmra.mxu3 %v3821_v8  ;;  %v2744_v20 = vand.u32 4294901760, %v2743_v24 }
 0x38c   :  { %2915 = vmatpush.msrb.mxu0 %v3787_v14  ;;  %2417 = vmatmul.f32.gmra.mxu2 %v3828_v25  ;;  %v2738_v14 = vand.u32 4294901760, %v2737_v13 }
 0x38d   :  { %2688 = vmatpush.msrb.mxu3 %v2524_v35  ;;  %2638 = vmatmul.f32.gmra.mxu1 %v3833_v33  ;;  %v2759_v35 = vsub.f32 %v2714_v36, %v2758_v34 }
 0x38e   :  { %2950 = vmatpush.msrb.mxu1 %v3765_v4 }
 0x38f   :  { %2690 = vmatpush.msrb.mxu3 %v2526_v12  ;;  %2607 = vmatmul.f32.gmra.mxu0 %v3828_v25  ;;  %v2745_v12 = vsub.f32 %v2743_v24, %v2744_v20  ;;  %v2760_v27 = vand.u32 4294901760, %v2759_v35 }
 0x391   :  { %v2746_v48 = vand.u32 4294901760, %v2745_v12  ;;  %v2761_v42 = vsub.f32 %v2759_v35, %v2760_v27 }
 0x393   :  { %2448 = vmatmul.f32.gmra.mxu3 %v3833_v33  ;;  %v2762_v1 = vand.u32 4294901760, %v2761_v42 }
 0x394   :  { %2533 = vmatmul.f32.vlgmr.msra.gmra.mxu2 %v3830_v32 }
 0x395   :  { %2794 = vmatmul.f32.vlgmr.msra.gmra.mxu1 %v4172_v54  ;;  %2826 = vmatpush.msra.mxu2 %v3774_v9  ;;  %v2753_v9 = vsub.f32 %v2751_v58, %v2752_v30 }
 0x397   :  { %2739 = vmatmul.f32.vlgmr.msra.gmra.mxu0 %v2738_v14  ;;  %2829 = vmatpush.msra.mxu2 %v3778_v10  ;;  %v2754_v10 = vand.u32 4294901760, %v2753_v9 }
 0x39b   :  { %2572 = vmatmul.f32.vlgmr.msra.gmra.mxu3 %v3814_v55 }
 0x39c   :  { %2541 = vmatmul.f32.gmra.mxu2 %v3839_v49  ;;  %2866 = vmatpush.msra.mxu3 %v3763_v3 }
 0x39d   :  { %2798 = vmatmul.f32.gmra.mxu1 %v2742_v46 }
 0x39e   :  { %2868 = vmatpush.msra.mxu3 %v3765_v4 }
 0x39f   :  { %2747 = vmatmul.f32.gmra.mxu0 %v2746_v48 }
 0x3a3   :  { %2576 = vmatmul.f32.gmra.mxu3 %v3823_v11 }
 0x3a4   :  { %2665 = vmatmul.f32.vlgmr.msrb.gmra.mxu2 %v3814_v55 }
 0x3a5   :  { %2802 = vmatmul.f32.gmra.mxu1 %v2750_v51 }
 0x3a7   :  { %2755 = vmatmul.f32.gmra.mxu0 %v2754_v10 }
 0x3ab   :  { %2692 = vmatmul.f32.vlgmr.msrb.gmra.mxu3 %v3814_v55 }
 0x3ac   :  { %2669 = vmatmul.f32.gmra.mxu2 %v3823_v11 }
 0x3ad   :  { %2806 = vmatmul.f32.gmra.mxu1 %v2758_v34 }
 0x3af   :  { %2763 = vmatmul.f32.gmra.mxu0 %v2762_v1 }
 0x3b3   :  { %2696 = vmatmul.f32.gmra.mxu3 %v3823_v11 }
 0x3b4   :  { %2832 = vmatmul.f32.vlgmr.msra.gmra.mxu2 %v4180_v31 }
 0x3b5   :  { %2952 = vmatmul.f32.vlgmr.msrb.gmra.mxu1 %v4172_v54 }
 0x3b7   :  { %2917 = vmatmul.f32.vlgmr.msrb.gmra.mxu0 %v4172_v54 }
 0x3bb   :  { %2872 = vmatmul.f32.vlgmr.msra.gmra.mxu3 %v2736_v23 }
 0x3bc   :  { %2837 = vmatmul.f32.gmra.mxu2 %v2743_v24 }
 0x3bd   :  { %2956 = vmatmul.f32.gmra.mxu1 %v2742_v46 }
 0x3bf   :  { %2921 = vmatmul.f32.gmra.mxu0 %v2742_v46 }
 0x3c3   :  { %2878 = vmatmul.f32.gmra.mxu3 %v2744_v20 }
 0x3c4   :  { %2842 = vmatmul.f32.gmra.mxu2 %v2751_v58 }
 0x3c5   :  { %2960 = vmatmul.f32.gmra.mxu1 %v2750_v51 }
 0x3c7   :  { %2925 = vmatmul.f32.gmra.mxu0 %v2750_v51 }
 0x3cb   :  { %2884 = vmatmul.f32.gmra.mxu3 %v2752_v30 }
 0x3cc   :  { %2847 = vmatmul.f32.gmra.mxu2 %v2759_v35 }
 0x3cd   :  { %2964 = vmatmul.f32.gmra.mxu1 %v2758_v34 }
 0x3cf   :  { %2929 = vmatmul.f32.gmra.mxu0 %v2758_v34 }
 0x3d3   :  { %2890 = vmatmul.f32.gmra.mxu3 %v2760_v27 }
 0x3f0   :  { %v2503_v3 = vpop.f32.mrf.mxu1 }
 0x3f4   :  { %v2476_v4 = vpop.f32.mrf.mxu0 }
 0x3f6   :  { %v2344_v61 = vpop.f32.mrf.mxu2 }
 0x3f9   :  { %v2507_v40 = vpop.f32.mrf.mxu1 }
 0x3fc   :  { %v2480_v6 = vpop.f32.mrf.mxu0 }
 0x3fe   :  { %v2352_v37 = vpop.f32.mrf.mxu2  ;;  %v2383_v54 = vpop.f32.mrf.mxu3 }
 0x3ff   :  { %v2384_v38 = vadd.f32 %v2383_v54, %v2344_v61 }
 0x402   :  { %v2633_v15 = vpop.f32.mrf.mxu1 }
 0x404   :  { %v2603_v16 = vpop.f32.mrf.mxu0 }
 0x406   :  { %v2387_v31 = vpop.f32.mrf.mxu3 }
 0x407   :  { %v2388_v56 = vadd.f32 %v2387_v31, %v2352_v37  ;;  %v2413_v50 = vpop.f32.mrf.mxu2 }
 0x408   :  { %v2414_v23 = vadd.f32 %v2413_v50, %v2384_v38 }
 0x40a   :  { %v2639_v46 = vpop.f32.mrf.mxu1 }
 0x40c   :  { %v2608_v7 = vpop.f32.mrf.mxu0 }
 0x40e   :  { %v2443_v43 = vpop.f32.mrf.mxu3 }
 0x40f   :  { %v2418_v22 = vpop.f32.mrf.mxu2  ;;  %v2444_v13 = vadd.f32 %v2443_v43, %v2414_v23 }
 0x410   :  { %v2419_v24 = vadd.f32 %v2418_v22, %v2388_v56 }
 0x411   :  { %v2477_v26 = vadd.f32 %v2476_v4, %v2444_v13 }
 0x412   :  { %v2795_v51 = vpop.f32.mrf.mxu1 }
 0x413   :  { %v4215_v14 = vadd.f32 %v2503_v3, %v2477_v26 }
 0x414   :  { %v2740_v20 = vpop.f32.mrf.mxu0 }
 0x415   :  { %v2796_v13 = vadd.f32 %v2795_v51, %v2740_v20 }
 0x416   :  { %v2449_v5 = vpop.f32.mrf.mxu3 }
 0x417   :  { %v2450_v28 = vadd.f32 %v2449_v5, %v2419_v24  ;;  %v2534_v29 = vpop.f32.mrf.mxu2 }
 0x419   :  { %v2481_v12 = vadd.f32 %v2480_v6, %v2450_v28 }
 0x41a   :  { %v2799_v30 = vpop.f32.mrf.mxu1 }
 0x41b   :  { %v4217_v58 = vadd.f32 %v2507_v40, %v2481_v12 }
 0x41c   :  { %v2748_v36 = vpop.f32.mrf.mxu0 }
 0x41e   :  { %v2573_v48 = vpop.f32.mrf.mxu3 }
 0x41f   :  { %v2542_v34 = vpop.f32.mrf.mxu2  ;;  %v2574_v9 = vadd.f32 %v2573_v48, %v2534_v29  ;;  %v2800_v29 = vadd.f32 %v2799_v30, %v2748_v36 }
 0x421   :  { %v2604_v35 = vadd.f32 %v2603_v16, %v2574_v9 }
 0x422   :  { %v2803_v61 = vpop.f32.mrf.mxu1 }
 0x423   :  { %v2634_v10 = vadd.f32 %v2633_v15, %v2604_v35 }
 0x424   :  { %v2756_v27 = vpop.f32.mrf.mxu0 }
 0x426   :  { %v2577_v42 = vpop.f32.mrf.mxu3 }
 0x427   :  { %v2578_v1 = vadd.f32 %v2577_v42, %v2542_v34  ;;  %v2666_v3 = vpop.f32.mrf.mxu2 }
 0x428   :  { %v2667_v4 = vadd.f32 %v2666_v3, %v2634_v10  ;;  %v2804_v3 = vadd.f32 %v2803_v61, %v2756_v27 }
 0x429   :  { %v2609_v37 = vadd.f32 %v2608_v7, %v2578_v1 }
 0x42a   :  { %v2807_v50 = vpop.f32.mrf.mxu1 }
 0x42b   :  { %v2640_v54 = vadd.f32 %v2639_v46, %v2609_v37 }
 0x42c   :  { %v2764_v31 = vpop.f32.mrf.mxu0 }
 0x42e   :  { %v2693_v38 = vpop.f32.mrf.mxu3 }
 0x42f   :  { %v2670_v6 = vpop.f32.mrf.mxu2  ;;  %v4219_v40 = vadd.f32 %v2693_v38, %v2667_v4 }
 0x430   :  { %v2671_v56 = vadd.f32 %v2670_v6, %v2640_v54 }
 0x432   :  { %v2953_v22 = vpop.f32.mrf.mxu1 }
 0x434   :  { %v2918_v15 = vpop.f32.mrf.mxu0 }
 0x436   :  { %v2697_v23 = vpop.f32.mrf.mxu3 }
 0x437   :  { %v4221_v43 = vadd.f32 %v2697_v23, %v2671_v56  ;;  %v2833_v16 = vpop.f32.mrf.mxu2 }
 0x438   :  { %v2834_v24 = vadd.f32 %v2833_v16, %v2796_v13 }
 0x43a   :  { %v2957_v48 = vpop.f32.mrf.mxu1 }
 0x43c   :  { %v2922_v46 = vpop.f32.mrf.mxu0 }
 0x43e   :  { %v2873_v26 = vpop.f32.mrf.mxu3 }
 0x43f   :  { %v2838_v5 = vpop.f32.mrf.mxu2  ;;  %v2874_v28 = vadd.f32 %v2873_v26, %v2834_v24 }
 0x440   :  { %v2839_v34 = vadd.f32 %v2838_v5, %v2800_v29 }
 0x441   :  { %v2919_v7 = vadd.f32 %v2918_v15, %v2874_v28  ;;  %v2808_v15 = vadd.f32 %v2807_v50, %v2764_v31 }
 0x442   :  { %v2961_v6 = vpop.f32.mrf.mxu1 }
 0x443   :  { %v2954_v12 = vadd.f32 %v2953_v22, %v2919_v7 }
 0x444   :  { %v2926_v54 = vpop.f32.mrf.mxu0 }
 0x445   :  { %v2984_v35 = vand.u32 4294901760, %v2954_v12 }
 0x446   :  { %v2879_v9 = vpop.f32.mrf.mxu3 }
 0x447   :  { %v2880_v10 = vadd.f32 %v2879_v9, %v2839_v34  ;;  %v2843_v42 = vpop.f32.mrf.mxu2  ;;  %v3024_v4 = vsub.f32 %v2954_v12, %v2984_v35 }
 0x448   :  { %v2844_v20 = vadd.f32 %v2843_v42, %v2804_v3 }
 0x449   :  { %v2923_v1 = vadd.f32 %v2922_v46, %v2880_v10  ;;  %v3025_v36 = vand.u32 4294901760, %v3024_v4 }
 0x44a   :  { %v2965_v46 = vpop.f32.mrf.mxu1 }
 0x44b   :  { %v2958_v37 = vadd.f32 %v2957_v48, %v2923_v1  ;;  %v3026_v13 = vsub.f32 %v3024_v4, %v3025_v36 }
 0x44c   :  { %v2930_v28 = vpop.f32.mrf.mxu0 }
 0x44d   :  { %v2982_v51 = vand.u32 4294901760, %v2958_v37  ;;  %v3027_v50 = vand.u32 4294901760, %v3026_v13 }
 0x44e   :  { %v2885_v38 = vpop.f32.mrf.mxu3 }
 0x44f   :  { %v3018_v56 = vsub.f32 %v2958_v37, %v2982_v51  ;;  %v2886_v23 = vadd.f32 %v2885_v38, %v2844_v20  ;;  %2983 = vmatpush.msrb.mxu2 %v2982_v51  ;;  %3146 = vmatpush.msra.mxu1 %v2982_v51  ;;  %v2848_v22 = vpop.f32.mrf.mxu2  ;;  %v4558_v37 = vld [vmem:[#allocation61_spill] sm:$0xff]  ;;  %v4562_v20 = vld [vmem:[#allocation42_spill] sm:$0xff] }
 0x450   :  { %v2849_v24 = vadd.f32 %v2848_v22, %v2808_v15  ;;  %v4570_v22 = vld [vmem:[#allocation19_spill] sm:$0xff] }
 0x451   :  { %v3019_v30 = vand.u32 4294901760, %v3018_v56  ;;  %v2927_v16 = vadd.f32 %v2926_v54, %v2886_v23  ;;  %2985 = vmatpush.msrb.mxu2 %v2984_v35  ;;  %3148 = vmatpush.msra.mxu1 %v2984_v35  ;;  %v4568_v23 = vld [vmem:[#allocation41_spill] sm:$0xff] }
 0x452   :  { %3150 = vmatmul.f32.vlgmr.msra.gmra.mxu1 %v3814_v55  ;;  %2991 = vmatmul.f32.vlgmr.msrb.gmra.mxu2 %v3830_v32 }
 0x453   :  { %3054 = vmatpush.msra.mxu2 %v3018_v56  ;;  %v3020_v27 = vsub.f32 %v3018_v56, %v3019_v30  ;;  %v2962_v61 = vadd.f32 %v2961_v6, %v2927_v16  ;;  %3117 = vmatpush.msra.mxu0 %v3019_v30  ;;  %v4566_v56 = vld [vmem:[#allocation47_spill] sm:$0xff] }
 0x454   :  { %v4569_v30 = vld [vmem:[#allocation59_spill] sm:$0xff] }
 0x455   :  { %3057 = vmatpush.msra.mxu2 %v3024_v4  ;;  %3121 = vmatpush.msra.mxu0 %v3025_v36  ;;  %v3021_v26 = vand.u32 4294901760, %v3020_v27  ;;  %v3174_v7 = vand.u32 4294901760, %v2962_v61 }
 0x456   :  { %v2891_v5 = vpop.f32.mrf.mxu3  ;;  %3123 = vmatmul.f32.vlgmr.msra.gmra.mxu0 %v3814_v55 }
 0x457   :  { %v2892_v31 = vadd.f32 %v2891_v5, %v2849_v24  ;;  %3022 = vmatpush.msrb.mxu3 %v3021_v26  ;;  %v3214_v12 = vsub.f32 %v2962_v61, %v3174_v7  ;;  %v4571_v61 = vld [vmem:[#allocation45_spill] sm:$0xff]  ;;  %v4572_v24 = vld [vmem:[#allocation28_spill] sm:$0xff]  ;;  %v4573_v5 = vld [vmem:[#allocation30_spill] sm:$0xff] }
 0x459   :  { %v2931_v29 = vadd.f32 %v2930_v28, %v2892_v31  ;;  %3028 = vmatpush.msrb.mxu3 %v3027_v50  ;;  %v3215_v10 = vand.u32 4294901760, %v3214_v12  ;;  %v4574_v28 = vld [vmem:[#allocation31_spill] sm:$0xff]  ;;  %v4575_v31 = vld [vmem:[#allocation32_spill] sm:$0xff] }
 0x45a   :  { %3030 = vmatmul.f32.vlgmr.msrb.gmra.mxu3 %v3814_v55  ;;  %3154 = vmatmul.f32.gmra.mxu1 %v3823_v11 }
 0x45b   :  { %v2966_v48 = vadd.f32 %v2965_v46, %v2931_v29  ;;  %3084 = vmatpush.msra.mxu3 %v2982_v51  ;;  %2999 = vmatmul.f32.gmra.mxu2 %v3839_v49  ;;  %v3216_v3 = vsub.f32 %v3214_v12, %v3215_v10  ;;  %v4563_v51 = vld [vmem:[#allocation37_spill] sm:$0xff] }
 0x45c   :  { %v4576_v46 = vld [vmem:[#allocation49_spill] sm:$0xff] }
 0x45d   :  { %v3172_v34 = vand.u32 4294901760, %v2966_v48  ;;  %3086 = vmatpush.msra.mxu3 %v2984_v35  ;;  %v3217_v4 = vand.u32 4294901760, %v3216_v3  ;;  %v4581_v3 = vld [vmem:[#allocation54_spill] sm:$0xff] }
 0x45e   :  { %3127 = vmatmul.f32.gmra.mxu0 %v3823_v11 }
 0x45f   :  { %v3208_v9 = vsub.f32 %v2966_v48, %v3172_v34  ;;  %3173 = vmatpush.msrb.mxu2 %v3172_v34  ;;  %3274 = vmatpush.msrb.mxu1 %v3172_v34 }
 0x461   :  { %v3209_v42 = vand.u32 4294901760, %v3208_v9  ;;  %3175 = vmatpush.msrb.mxu2 %v3174_v7  ;;  %3244 = vmatpush.msrb.mxu0 %v3208_v9 }
 0x462   :  { %3276 = vmatpush.msrb.mxu1 %v3174_v7  ;;  %3034 = vmatmul.f32.gmra.mxu3 %v3823_v11 }
 0x463   :  { %v3210_v1 = vsub.f32 %v3208_v9, %v3209_v42  ;;  %3060 = vmatmul.f32.vlgmr.msra.gmra.mxu2 %v3817_v63  ;;  %3247 = vmatpush.msrb.mxu0 %v3214_v12  ;;  %v4577_v12 = vld [vmem:[#allocation36_spill] sm:$0xff] }
 0x464   :  { %3307 = vmatpush.msra.mxu2 %v3209_v42  ;;  %3280 = vmatmul.f32.vlgmr.msrb.gmra.mxu1 %v3821_v8  ;;  %v4580_v42 = vld [vmem:[#allocation60_spill] sm:$0xff] }
 0x465   :  { %v3211_v35 = vand.u32 4294901760, %v3210_v1 }
 0x466   :  { %3311 = vmatpush.msra.mxu2 %v3215_v10  ;;  %3250 = vmatmul.f32.vlgmr.msrb.gmra.mxu0 %v3817_v63  ;;  %v1088_v63 = vadd.f32 %v4021_v2, %v4013_v47  ;;  %v1736_v47 = vadd.f32 %v4128_v59, %v4120_v39  ;;  %v4564_v39 = vld [vmem:[#allocation64_spill] sm:$0xff]  ;;  %v4579_v10 = vld [vmem:[#allocation57_spill] sm:$0xff] }
 0x467   :  { %3212 = vmatpush.msrb.mxu3 %v3211_v35  ;;  %v1740_v1 = vadd.f32 %v4580_v42, %v4579_v10  ;;  %v4604_v42 = vld [vmem:[#allocation34_spill] sm:$0xff] }
 0x469   :  { %3218 = vmatpush.msrb.mxu3 %v3217_v4  ;;  %v4582_v4 = vld [vmem:[#allocation44_spill] sm:$0xff] }
 0x46a   :  { %3090 = vmatmul.f32.vlgmr.msra.gmra.mxu3 %v3821_v8  ;;  %v634_v8 = vadd.f32 %v3936_v21, %v3934_v19  ;;  %v1926_v21 = vadd.f32 %v4150_v44, %v4148_v41  ;;  %v4567_v41 = vld [vmem:[#allocation48_spill] sm:$0xff] }
 0x46b   :  { %3336 = vmatpush.msra.mxu3 %v3172_v34  ;;  %3065 = vmatmul.f32.gmra.mxu2 %v3828_v25  ;;  %v1282_v44 = vadd.f32 %v4567_v41, %v4566_v56  ;;  %v4578_v34 = vld [vmem:[#allocation46_spill] sm:$0xff]  ;;  %v4596_v41 = vld [vmem:[#allocation43_spill] sm:$0xff] }
 0x46c   :  { %3286 = vmatmul.f32.gmra.mxu1 %v3833_v33  ;;  %v664_v2 = vadd.f32 %v3918_v60, %v634_v8  ;;  %v1956_v16 = vadd.f32 %v4569_v30, %v1926_v21  ;;  %v4583_v8 = vld [vmem:[#allocation50_spill] sm:$0xff]  ;;  %v4588_v21 = vld [vmem:[#allocation29_spill] sm:$0xff] }
 0x46d   :  { %3338 = vmatpush.msra.mxu3 %v3174_v7  ;;  %v638_v7 = vadd.f32 %v4574_v28, %v4573_v5  ;;  %v4600_v5 = vld [vmem:[#allocation25_spill] sm:$0xff] }
 0x46e   :  { %3255 = vmatmul.f32.gmra.mxu0 %v3828_v25  ;;  %v1278_v25 = vadd.f32 %v4043_v18, %v4041_v0  ;;  %v4557_v0 = vld [vmem:[#allocation27_spill] sm:$0xff] }
 0x470   :  { %v1308_v19 = vadd.f32 %v4025_v17, %v1278_v25  ;;  %v4565_v17 = vld [vmem:[#allocation23_spill] sm:$0xff] }
 0x471   :  { %v694_v6 = vadd.f32 %v4565_v17, %v664_v2  ;;  %v4587_v2 = vld [vmem:[#allocation18_spill] sm:$0xff] }
 0x472   :  { %3096 = vmatmul.f32.gmra.mxu3 %v3833_v33  ;;  %v444_v33 = vadd.f32 %v3914_v57, %v3906_v52  ;;  %v1766_v52 = vadd.f32 %v4558_v37, %v1736_v47  ;;  %v4559_v57 = vld [vmem:[#allocation22_spill] sm:$0xff]  ;;  %v1338_v36 = vadd.f32 %v4568_v23, %v1308_v19 }
 0x473   :  { %3181 = vmatmul.f32.vlgmr.msrb.gmra.mxu2 %v3830_v32  ;;  %v727_v50 = vadd.f32 %v4575_v31, %v694_v6  ;;  %v4595_v17 = vld [vmem:[#allocation66_spill] sm:$0xff]  ;;  %v4601_v31 = vld [vmem:[#allocation51_spill] sm:$0xff] }
 0x474   :  { %v1796_v59 = vadd.f32 %v4564_v39, %v1766_v52  ;;  %v1371_v29 = vadd.f32 %v4576_v46, %v1338_v36  ;;  %v4590_v52 = vld [vmem:[#allocation26_spill] sm:$0xff]  ;;  %v4594_v39 = vld [vmem:[#allocation53_spill] sm:$0xff]  ;;  %v4597_v36 = vld [vmem:[#allocation63_spill] sm:$0xff] }
 0x476   :  { %v1829_v35 = vadd.f32 %v4581_v3, %v1796_v59  ;;  %v4301_v25 = vadd.f32 %v4583_v8, %v1371_v29  ;;  %v4602_v29 = vld [vmem:[#allocation38_spill] sm:$0xff]  ;;  %v4607_v8 = vld [vmem:[#allocation20_spill] sm:$0xff] }
 0x478   :  { %v1856_v59 = vadd.f32 %v4594_v39, %v1829_v35  ;;  %v3432_v23 = vmul.f32 %v4301_v25, %v4301_v25  ;;  %v4606_v35 = vld [vmem:[#allocation62_spill] sm:$0xff] }
 0x47a   :  { %3220 = vmatmul.f32.vlgmr.msrb.gmra.mxu3 %v3814_v55  ;;  %v3440_v46 = vsub.f32 %v4219_v40, %v3432_v23 }
 0x47b   :  { %3189 = vmatmul.f32.gmra.mxu2 %v3839_v49  ;;  %v474_v49 = vadd.f32 %v3922_v62, %v444_v33  ;;  %v4561_v62 = vld [vmem:[#allocation40_spill] sm:$0xff]  ;;  %v4584_v33 = vld [vmem:[#allocation67_spill] sm:$0xff] }
 0x47d   :  { %v504_v18 = vadd.f32 %v4557_v0, %v474_v49 }
 0x47f   :  { %v537_v27 = vadd.f32 %v4570_v22, %v504_v18  ;;  %v4589_v18 = vld [vmem:[#allocation65_spill] sm:$0xff] }
 0x480   :  { %v1771_v37 = vadd.f32 %v4589_v18, %v1740_v1  ;;  %v4605_v1 = vld [vmem:[#allocation52_spill] sm:$0xff]  ;;  %v4610_v18 = vld [vmem:[#allocation55_spill] sm:$0xff] }
 0x481   :  { %v4307_v19 = vadd.f32 %v4587_v2, %v537_v27  ;;  %v3442_v2 = vmul.f32 1.0208334, %v3440_v46 }
 0x482   :  { %3224 = vmatmul.f32.gmra.mxu3 %v3823_v11  ;;  %v1802_v6 = vadd.f32 %v4595_v17, %v1771_v37 }
 0x483   :  { %3313 = vmatmul.f32.vlgmr.msra.gmra.mxu2 %v3814_v55 }
 0x48a   :  { %3340 = vmatmul.f32.vlgmr.msra.gmra.mxu3 %v3814_v55  ;;  %v1118_v55 = vadd.f32 %v4029_v45, %v1088_v63  ;;  %v4560_v45 = vld [vmem:[#allocation24_spill] sm:$0xff]  ;;  %v1313_v63 = vadd.f32 %v4582_v4, %v1282_v44 }
 0x48b   :  { %3317 = vmatmul.f32.gmra.mxu2 %v3823_v11  ;;  %v448_v54 = vadd.f32 %v4560_v45, %v4559_v57  ;;  %v669_v57 = vadd.f32 %v4590_v52, %v638_v7  ;;  %v4591_v45 = vld [vmem:[#allocation33_spill] sm:$0xff] }
 0x48c   :  { %v1344_v44 = vadd.f32 %v4596_v41, %v1313_v63 }
 0x48d   :  { %v479_v26 = vadd.f32 %v4572_v24, %v448_v54  ;;  %v4315_v54 = vadd.f32 %v4591_v45, %v727_v50  ;;  %v700_v28 = vadd.f32 %v4600_v5, %v669_v57 }
 0x48e   :  { %v1375_v50 = vadd.f32 %v4601_v31, %v1344_v44 }
 0x48f   :  { %v510_v0 = vadd.f32 %v4588_v21, %v479_v26  ;;  %v3430_v7 = vmul.f32 %v4315_v54, %v4315_v54 }
 0x490   :  { %v4350_v3 = vadd.f32 %v4605_v1, %v1375_v50 }
 0x492   :  { %3344 = vmatmul.f32.gmra.mxu3 %v3823_v11  ;;  %v1148_v11 = vadd.f32 %v4035_v53, %v1118_v55  ;;  %v1092_v53 = vadd.f32 %v4562_v20, %v4561_v62  ;;  %v4585_v55 = vld [vmem:[#allocation68_spill] sm:$0xff]  ;;  %v4592_v62 = vld [vmem:[#allocation69_spill] sm:$0xff]  ;;  %v3433_v45 = vmul.f32 %v4350_v3, %v4350_v3 }
 0x493   :  { %v1930_v49 = vadd.f32 %v4585_v55, %v4584_v33  ;;  %v4608_v55 = vld [vmem:[#allocation35_spill] sm:$0xff] }
 0x494   :  { %v1181_v38 = vadd.f32 %v4563_v51, %v1148_v11  ;;  %v1123_v13 = vadd.f32 %v4571_v61, %v1092_v53  ;;  %v4586_v11 = vld [vmem:[#allocation58_spill] sm:$0xff]  ;;  %v4593_v51 = vld [vmem:[#allocation39_spill] sm:$0xff]  ;;  %v3354_v61 = vmul.f32 %v4307_v19, %v4307_v19  ;;  %v3441_v44 = vsub.f32 %v4221_v43, %v3433_v45 }
 0x495   :  { %v1986_v47 = vadd.f32 %v4586_v11, %v1956_v16  ;;  %v1961_v30 = vadd.f32 %v4597_v36, %v1930_v49  ;;  %v4598_v16 = vld [vmem:[#allocation70_spill] sm:$0xff]  ;;  %v4609_v11 = vld [vmem:[#allocation71_spill] sm:$0xff]  ;;  %v4373_v36 = vstv %s3353_s20 }
 0x496   :  { %v4291_v48 = vadd.f32 %v4577_v12, %v1181_v38  ;;  %v1154_v9 = vadd.f32 %v4578_v34, %v1123_v13  ;;  %v4599_v13 = vld [vmem:[#allocation21_spill] sm:$0xff]  ;;  %v3360_v34 = vsub.f32 %v1856_v59, %v3354_v61  ;;  %v3443_v46 = vmul.f32 1.0208334, %v3441_v44 }
 0x497   :  { %v2019_v20 = vadd.f32 %v4592_v62, %v1986_v47  ;;  %v541_v24 = vadd.f32 %v4599_v13, %v510_v0  ;;  %v1992_v4 = vadd.f32 %v4606_v35, %v1961_v30  ;;  %v3434_v44 = vmul.f32 %v4301_v25, %v4315_v54 }
 0x498   :  { %v3356_v53 = vmul.f32 %v4291_v48, %v4291_v48  ;;  %v1185_v38 = vadd.f32 %v4593_v51, %v1154_v9  ;;  %v4603_v9 = vld [vmem:[#allocation56_spill] sm:$0xff]  ;;  %v3362_v0 = vmul.f32 1.0208334, %v3360_v34 }
 0x499   :  { %v2046_v22 = vadd.f32 %v4598_v16, %v2019_v20  ;;  %v1833_v10 = vadd.f32 %v4603_v9, %v1802_v6  ;;  %v4354_v33 = vadd.f32 %v4607_v8, %v541_v24  ;;  %v2023_v47 = vadd.f32 %v4609_v11, %v1992_v4  ;;  %v4611_v20 = vld [vmem:[#allocation72_spill] sm:$0xff] }
 0x49a   :  { %v3364_v26 = vsub.f32 %v4215_v14, %v3356_v53  ;;  %v4343_v12 = vadd.f32 %v4602_v29, %v1185_v38  ;;  %v731_v14 = vadd.f32 %v4604_v42, %v700_v28  ;;  %v3382_v30 = vadd.f32 %v3356_v53, %v3354_v61 }
 0x49b   :  { %v3436_v63 = vsub.f32 %v2046_v22, %v3430_v7  ;;  %v1860_v37 = vadd.f32 %v4610_v18, %v1833_v10  ;;  %v2050_v51 = vadd.f32 %v4611_v20, %v2023_v47  ;;  %v3355_v39 = vmul.f32 %v4354_v33, %v4354_v33 }
 0x49c   :  { %v3366_v40 = vmul.f32 1.0208334, %v3364_v26  ;;  %v4358_v49 = vadd.f32 %v4608_v55, %v731_v14  ;;  %v3357_v21 = vmul.f32 %v4343_v12, %v4343_v12  ;;  %v4375_v22 = vstv %s3429_s21 }
 0x49d   :  { %v3438_v62 = vmul.f32 1.0208334, %v3436_v63  ;;  %v3361_v16 = vsub.f32 %v1860_v37, %v3355_v39  ;;  %v4377_v24 = vstv %s3351_s22  ;;  %v3458_v26 = vadd.f32 %v3432_v23, %v3430_v7 }
 0x49e   :  { %v3386_v59 = vadd.f32 %v3366_v40, %v3362_v0  ;;  %v3365_v17 = vsub.f32 %v4217_v58, %v3357_v21  ;;  %v3431_v6 = vmul.f32 %v4358_v49, %v4358_v49  ;;  %v4379_v28 = vstv %s3427_s23 }
 0x49f   :  { %v3462_v41 = vadd.f32 %v3442_v2, %v3438_v62  ;;  %v3384_v43 = vadd.f32 %v3382_v30, %v4377_v24  ;;  %v3363_v29 = vmul.f32 1.0208334, %v3361_v16  ;;  %v3460_v61 = vadd.f32 %v3458_v26, %v4379_v28 }
 0x4a0   :  { %v3437_v5 = vsub.f32 %v2050_v51, %v3431_v6  ;;  %v3367_v58 = vmul.f32 1.0208334, %v3365_v17  ;;  %v3388_v31 = vadd.f32 %v3386_v59, %v4373_v36  ;;  %v3383_v4 = vadd.f32 %v3357_v21, %v3355_v39 }
 0x4a1   :  { %v3464_v50 = vadd.f32 %v3462_v41, %v4375_v22  ;;  %v3459_v63 = vadd.f32 %v3433_v45, %v3431_v6  ;;  %v3359_v30 = vmul.f32 %v4343_v12, %v4354_v33 }
 0x4a2   :  { %v3439_v34 = vmul.f32 1.0208334, %v3437_v5  ;;  %v3387_v7 = vadd.f32 %v3367_v58, %v3363_v29  ;;  %v4387_v10 = vmul.f32 %v3388_v31, %v3384_v43 }
 0x4a3   :  { %v4389_v14 = vmul.f32 %v3464_v50, %v3460_v61  ;;  %v3461_v47 = vadd.f32 %v3459_v63, %v4379_v28  ;;  %v3373_v29 = vmul.f32 2.0, %v3359_v30 }
 0x4a4   :  { %v3463_v1 = vadd.f32 %v3443_v46, %v3439_v34  ;;  %v3389_v40 = vadd.f32 %v3387_v7, %v4373_v36  ;;  %3550 = vrcp.f32 %v4387_v10  ;;  %v3448_v46 = vmul.f32 2.0, %v3434_v44 }
 0x4a5   :  { %3552 = vrcp.f32 %v4389_v14  ;;  %vm3399_vm1 = vweird.f32 %v4387_v10  ;;  %vm3475_vm5 = vweird.f32 %v4389_v14 }
 0x4cf   :  { %v3151_v13 = vpop.f32.mrf.mxu1 }
 0x4d3   :  { %v3124_v57 = vpop.f32.mrf.mxu0 }
 0x4d5   :  { %v4253_v32 = vpop.f32.mrf.mxu2 }
 0x4d7   :  { %v3155_v55 = vpop.f32.mrf.mxu1 }
 0x4db   :  { %v3128_v42 = vpop.f32.mrf.mxu0 }
 0x4dd   :  { %v4274_v60 = vpop.f32.mrf.mxu3 }
 0x4de   :  { %v4281_v15 = vpop.f32.mrf.mxu2  ;;  %v3032_v9 = vadd.f32 %v4274_v60, %v4253_v32  ;;  %v3465_v32 = vadd.f32 %v3463_v1, %v4375_v22  ;;  %v3385_v60 = vadd.f32 %v3383_v4, %v4377_v24  ;;  %v3451_v1 = vadd.f32 %v4379_v28, %v3448_v46 }
 0x4df   :  { %v4433_v4 = vadd.f32 %v4377_v24, %v3373_v29 }
 0x4e0   :  { %v4400_v0 = vmul.f32 %v3389_v40, %v3385_v60  ;;  %v4402_v18 = vmul.f32 %v3465_v32, %v3461_v47 }
 0x4e2   :  { %3554 = vrcp.f32 %v4400_v0  ;;  %vm3413_vm11 = vweird.f32 %v4400_v0  ;;  %v3417_v29 = vand.u32 2147483647, %v4400_v0  ;;  %vm3489_vm13 = vweird.f32 %v4402_v18 }
 0x4e3   :  { %v3251_v45 = vpop.f32.mrf.mxu0  ;;  %3556 = vrcp.f32 %v4402_v18 }
 0x4e4   :  { %vm3418_vm15 = vcmp.eq.f32.partialorder %v3417_v29, 8.507059e+37 }
 0x4e5   :  { %v4323_v56 = vpop.f32.mrf.mxu3 }
 0x4e6   :  { %v4330_v27 = vpop.f32.mrf.mxu2 }
 0x4e7   :  { %v3062_v35 = vadd.f32 %v4330_v27, %v3032_v9  ;;  %v3036_v27 = vadd.f32 %v4323_v56, %v4281_v15  ;;  %v3358_v15 = vmul.f32 %v4291_v48, %v4307_v19 }
 0x4e9   :  { %v3372_v43 = vmul.f32 2.0, %v3358_v15 }
 0x4ed   :  { %v3091_v52 = vpop.f32.mrf.mxu3 }
 0x4ee   :  { %v3066_v38 = vpop.f32.mrf.mxu2  ;;  %v3092_v8 = vadd.f32 %v3091_v52, %v3062_v35  ;;  %v4404_v52 = vpop.eup %3550  ;;  %v3375_v35 = vadd.f32 %v4377_v24, %v3372_v43 }
 0x4ef   :  { %v3067_v37 = vadd.f32 %v3066_v38, %v3036_v27  ;;  %v4406_v62 = vpop.eup %3552  ;;  %v3395_v56 = vmul.f32 %v4404_v52, %v4387_v10  ;;  %v3281_v38 = vpop.f32.mrf.mxu1  ;;  %vm3400_vm2 = vweird.f32 %v4404_v52 }
 0x4f0   :  { %v3125_v2 = vadd.f32 %v3124_v57, %v3092_v8  ;;  %v3471_v59 = vmul.f32 %v4406_v62, %v4389_v14  ;;  %v4420_v48 = vpop.eup %3554  ;;  %vm3476_vm3 = vweird.f32 %v4406_v62  ;;  %vm4446_vm4 = vmor %vm3399_vm1, %vm3400_vm2  ;;  %vm3502_vm1 = vcmask 80896  }
 0x4f1   :  { %v4422_v26 = vpop.eup %3556  ;;  %v3409_v12 = vmul.f32 %v4420_v48, %v4400_v0  ;;  %vm4453_vm6 = vmor %vm3475_vm5, %vm3476_vm3  ;;  %vm3414_vm8 = vweird.f32 %v4420_v48  ;;  %vm3504_vm2 = vcmask 74752   ;;  %vm3517_vm3 = vcmask 0  }
 0x4f2   :  { %v3152_v20 = vadd.f32 %v3151_v13, %v3125_v2  ;;  %v3396_v13 = vsub.f32 1.0, %v3395_v56  ;;  %v3472_v19 = vsub.f32 1.0, %v3471_v59  ;;  %v3485_v34 = vmul.f32 %v4422_v26, %v4402_v18  ;;  %vm4478_vm12 = vmor %vm3413_vm11, %vm3414_vm8 }
 0x4f3   :  { %v3410_v60 = vsub.f32 1.0, %v3409_v12  ;;  %vm3490_vm10 = vweird.f32 %v4422_v26 }
 0x4f4   :  { %v3368_v17 = vsub.f32 %v3152_v20, %v3358_v15  ;;  %v3397_v25 = vmul.f32 %v4404_v52, %v3396_v13  ;;  %v3473_v33 = vmul.f32 %v4406_v62, %v3472_v19  ;;  %v3486_v47 = vsub.f32 1.0, %v3485_v34  ;;  %vm3491_vm14 = vmor %vm3489_vm13, %vm3490_vm10 }
 0x4f5   :  { %v3097_v53 = vpop.f32.mrf.mxu3  ;;  %v3403_v20 = vand.u32 2147483647, %v4387_v10 }
 0x4f6   :  { %v3182_v23 = vpop.f32.mrf.mxu2  ;;  %v3098_v51 = vadd.f32 %v3097_v53, %v3067_v37  ;;  %v3370_v5 = vmul.f32 1.0208334, %v3368_v17  ;;  %v3256_v53 = vpop.f32.mrf.mxu0  ;;  %v3398_v40 = vadd.f32 %v4404_v52, %v3397_v25  ;;  %v3435_v37 = vmul.f32 %v4350_v3, %v4358_v49 }
 0x4f7   :  { %v3287_v63 = vpop.f32.mrf.mxu1  ;;  %v3479_v3 = vand.u32 2147483647, %v4389_v14  ;;  %v3487_v17 = vmul.f32 %v4422_v26, %v3486_v47  ;;  %vm3404_vm7 = vcmp.eq.f32.partialorder %v3403_v20, 8.507059e+37 }
 0x4f8   :  { %v3129_v6 = vadd.f32 %v3128_v42, %v3098_v51  ;;  %v3377_v9 = vmul.f32 2.0, %v3370_v5  ;;  %v3481_v51 = vand.u32 2147483648, %v4389_v14 }
 0x4f9   :  { %vm3480_vm9 = vcmp.eq.f32.partialorder %v3479_v3, 8.507059e+37 }
 0x4fa   :  { %v3156_v58 = vadd.f32 %v3155_v55, %v3129_v6  ;;  %v3405_v55 = vand.u32 2147483648, %v4387_v10  ;;  %v3380_v24 = vadd.f32 %v4373_v36, %v3377_v9  ;;  %v3411_v10 = vmul.f32 %v4420_v48, %v3410_v60 }
 0x4fb   :  { %v3482_v14 = vor.u32 1.1754944e-38, %v3481_v51 }
 0x4fc   :  { %v3406_v56 = vor.u32 1.1754944e-38, %v3405_v55  ;;  %v3412_v5 = vadd.f32 %v4420_v48, %v3411_v10 }
 0x4fd   :  { %v3221_v11 = vpop.f32.mrf.mxu3 }
 0x4fe   :  { %v3190_v21 = vpop.f32.mrf.mxu2  ;;  %v3222_v39 = vadd.f32 %v3221_v11, %v3182_v23  ;;  %v3369_v23 = vsub.f32 %v3156_v58, %v3359_v30  ;;  %v3474_v11 = vadd.f32 %v4406_v62, %v3473_v33  ;;  %v3390_v30 = vmul.f32 %v3380_v24, %v3375_v35 }
 0x4ff   :  { %v3416_v9 = vsel %vm4478_vm12, %v4420_v48, %v3412_v5 }
 0x500   :  { %v3252_v41 = vadd.f32 %v3251_v45, %v3222_v39  ;;  %v3371_v27 = vmul.f32 1.0208334, %v3369_v23  ;;  %v3478_v59 = vsel %vm4453_vm6, %v4406_v62, %v3474_v11  ;;  %v3488_v62 = vadd.f32 %v4422_v26, %v3487_v17 }
 0x501   :  { %v3483_v58 = vsel %vm3480_vm9, %v3482_v14, %v3478_v59 }
 0x502   :  { %v3282_v50 = vadd.f32 %v3281_v38, %v3252_v41  ;;  %v3402_v38 = vsel %vm4446_vm4, %v4404_v52, %v3398_v40  ;;  %v3378_v6 = vmul.f32 2.0, %v3371_v27  ;;  %v3492_v23 = vsel %vm3491_vm14, %v4422_v26, %v3488_v62 }
 0x503   :  { %v3407_v52 = vsel %vm3404_vm7, %v3406_v56, %v3402_v38 }
 0x504   :  { %v3422_v46 = vmul.f32 %v3407_v52, %v3390_v30 }
 0x505   :  { %v3225_v57 = vpop.f32.mrf.mxu3 }
 0x506   :  { %v3314_v16 = vpop.f32.mrf.mxu2  ;;  %v3226_v31 = vadd.f32 %v3225_v57, %v3190_v21 }
 0x507   :  { %v3315_v61 = vadd.f32 %v3314_v16, %v3282_v50  ;;  %v3449_v16 = vmul.f32 2.0, %v3435_v37 }
 0x508   :  { %v3257_v42 = vadd.f32 %v3256_v53, %v3226_v31  ;;  %v3381_v31 = vadd.f32 %v4373_v36, %v3378_v6  ;;  %v3419_v53 = vand.u32 2147483648, %v4400_v0  ;;  %v3493_v36 = vand.u32 2147483647, %v4402_v18 }
 0x509   :  { %v3452_v33 = vadd.f32 %v4379_v28, %v3449_v16 }
 0x50a   :  { %v3288_v21 = vadd.f32 %v3287_v63, %v3257_v42  ;;  %v3391_v34 = vmul.f32 %v3381_v31, %v4433_v4  ;;  %vm3494_vm0 = vcmp.eq.f32.partialorder %v3493_v36, 8.507059e+37 }
 0x50d   :  { %v3341_v54 = vpop.f32.mrf.mxu3 }
 0x50e   :  { %v3342_v7 = vadd.f32 %v3341_v54, %v3315_v61  ;;  %v3318_v32 = vpop.f32.mrf.mxu2  ;;  %v3495_v61 = vand.u32 2147483648, %v4402_v18 }
 0x50f   :  { %v3319_v15 = vadd.f32 %v3318_v32, %v3288_v21 }
 0x510   :  { %v3444_v8 = vsub.f32 %v3342_v7, %v3434_v44  ;;  %v3420_v7 = vor.u32 1.1754944e-38, %v3419_v53  ;;  %v3496_v42 = vor.u32 1.1754944e-38, %v3495_v61 }
 0x512   :  { %v3446_v2 = vmul.f32 1.0208334, %v3444_v8  ;;  %v3497_v28 = vsel %vm3494_vm0, %v3496_v42, %v3492_v23 }
 0x514   :  { %v3453_v39 = vmul.f32 2.0, %v3446_v2 }
 0x515   :  { %v3345_v49 = vpop.f32.mrf.mxu3 }
 0x516   :  { %v3456_v41 = vadd.f32 %v4375_v22, %v3453_v39  ;;  %v3346_v44 = vadd.f32 %v3345_v49, %v3319_v15 }
 0x518   :  { %v3445_v13 = vsub.f32 %v3346_v44, %v3435_v37  ;;  %v3466_v19 = vmul.f32 %v3456_v41, %v3451_v1  ;;  %v3421_v1 = vsel %vm3418_vm15, %v3420_v7, %v3416_v9 }
 0x519   :  { %v3423_v35 = vmul.f32 %v3421_v1, %v3391_v34 }
 0x51a   :  { %v3447_v50 = vmul.f32 1.0208334, %v3445_v13  ;;  %v3498_v43 = vmul.f32 %v3483_v58, %v3466_v19 }
 0x51c   :  { %v3454_v25 = vmul.f32 2.0, %v3447_v50  ;;  %v3500_v12 = vadd.f32 %v3498_v43, %v3422_v46 }
 0x51e   :  { %v3457_v0 = vadd.f32 %v4375_v22, %v3454_v25  ;;  %v3503_v8 = vsel %vm3502_vm1, %v3500_v12, 0.0 }
 0x520   :  { %v3467_v18 = vmul.f32 %v3457_v0, %v3452_v33 }
 0x522   :  { %v3499_v63 = vmul.f32 %v3497_v28, %v3467_v18 }
 0x524   :  { %v3501_v22 = vadd.f32 %v3499_v63, %v3423_v35 }
 0x526   :  { %v3505_v4 = vsel %vm3504_vm2, %v3501_v22, 0.0 }
 0x527   :  { %v3506_v40 = vadd.f32 %v3505_v4, %v3503_v8 }
 0x529   :  { %3507 = vadd.xlane.f32.xlu0 %v3506_v40 }
 0x59c   :  { %v3508_v55 = vpop.xlane.xlu0 %3507 }
 0x59d   :  { %v3509_v48 = vrot.slane %v3508_v55, 4 }
 0x59f   :  { %v3510_v32 = vadd.f32 %v3509_v48, %v3508_v55 }
 0x5a1   :  { %v3511_v26 = vrot.slane %v3510_v32, 2 }
 0x5a3   :  { %v3512_v60 = vadd.f32 %v3511_v26, %v3510_v32 }
 0x5a5   :  { %v3513_v11 = vrot.slane %v3512_v60, 1 }
 0x5a7   :  { %v3514_v47 = vadd.f32 %v3513_v11, %v3512_v60 }
 0x5a9   :  { %3540 = vpush %v3514_v47 }
 0x5da   :  { %s3541_s29 = spop %3540 }
 0x5db   :  { %v3516_v24 = vstv %s3541_s29 }
 0x5dc   :  { %3518 = vst.msk [vmem:[#allocation12] sm:$0x1] %vm3517_vm3, %v3516_v24 }
 0x5dd   :  { %3529 = dma.vmem_to_hbm [thread:$0]  %s3525_s25, 16, %s3527_s28, [#allocation4]  }
 0x5de   :  { %3706 = dma.done.wait [#allocation4], 16  }
 0x5df   :  { %3707 = vsyncadd [#allocation4], 4294967280 }
 0x5e0   :  { %3534 = vsyncpa [#allocation3], 1 }
 0x5e1   :  { %3535 = vsyncpa [#allocation8], 1 }
 0x5e2   :  { %3536 = vsyncpa [#allocation11], 1 }
 0x5e3   :  { %3537 = vsyncpa [#allocation4], 1 }
 0x5e4   :  { %3538 = vsyncpa [#allocation5], 1 }

</bundles_post_ra>
